<compile_context>
chip_gen: v7x
topology: tpu7x:2x2x1
jax: 0.10.0
libtpu: 0.0.40
codegen_flags: <defaults>
</compile_context>

<pallas_src>
import functools

import jax
import jax.numpy as jnp
from jax import lax
from jax.experimental import pallas as pl
from jax.experimental.pallas import tpu as pltpu

CHANNEL_NUM = 3
SQUEEZE_FACTOR = 2
SQUARE_SF = SQUEEZE_FACTOR * SQUEEZE_FACTOR      # 4
SPLIT_POINT = 1
CLAMP = 0.8
C1 = SPLIT_POINT * CHANNEL_NUM                   # 3  channels of x1
C2 = (SQUARE_SF - SPLIT_POINT) * CHANNEL_NUM     # 9  channels of x2
REP2 = SQUARE_SF - SPLIT_POINT                   # repeat factor, first half (3)
REP1 = SPLIT_POINT                               # repeat factor, second half (1)

OUT_PAD = 8      # conv output rows: H -> 0..2, G -> 3..5, padded to 8 sublanes
CIN1_PAD = 8     # conv-1 contraction dim, 3 channels padded -> 8
CIN2_PAD = 16    # conv-2 contraction dim, 9 channels padded -> 16

_TAPS = tuple((dy, dx) for dy in (-1, 0, 1) for dx in (-1, 0, 1))


# ---------------------------------------------------------------------------
# Fused kernel: conv(H,G) on x1 -> y2 ; conv(H',G') on y2 -> y1
# ---------------------------------------------------------------------------
def _make_kernel(H, W, clamp, b_blk):
    HW = H * W

    def kernel(x1_ref, x2_ref, w1_ref, b1_ref, w2_ref, b2_ref, mask_ref,
               y1_ref, y2_ref):
        # x1_ref : (b_blk, C1, HW)  flat x1 images
        # x2_ref : (b_blk, C2, HW)  flat x2 images
        # w*_ref : (9, OUT_PAD, CIN*_PAD)  tap-major stacked [H;G] weights
        # b*_ref : (OUT_PAD, HW)           bias pre-broadcast along lanes
        # mask_ref: (9, HW)  1.0 where the tap's neighbour pixel is in-image
        # y1_ref : (b_blk, C1, HW)   y2_ref : (b_blk, C2, HW)

        def conv3x3(img_pad, w_ref, b_ref):
            # img_pad: (CIN_PAD, HW) flat image, channel-padded with zero rows.
            # 3x3 conv on the flat layout: 9 per-tap MXU matmuls, f32 accumulate.
            # Shifted windows come from an XLU roll of the whole flat image; the
            # row/col-wraparound lanes are killed AFTER the matmul with the
            # per-tap lane mask (mask commutes with the channel contraction).
            acc = b_ref[...]                                   # (OUT_PAD, HW)
            for t, (dy, dx) in enumerate(_TAPS):
                off = dy * W + dx
                if off == 0:
                    win = img_pad
                else:
                    win = pltpu.roll(img_pad, shift=(-off) % HW, axis=1)
                contrib = jnp.dot(w_ref[t], win,
                                  preferred_element_type=jnp.float32)
                if (dy, dx) != (0, 0):
                    contrib = contrib * mask_ref[t:t + 1, :]
                acc = acc + contrib
            return acc

        def scale_shift(hg):
            h = hg[0:CHANNEL_NUM, :]
            g = hg[CHANNEL_NUM:2 * CHANNEL_NUM, :]
            # exp(clamp * (2*sigmoid(h) - 1)) == exp(clamp * tanh(h/2)); both
            # transcendentals live on the EUP slot, no VALU divide.
            return jnp.exp(clamp * jnp.tanh(0.5 * h)), g

        # Hoisted zero pad rows (channel padding for the MXU contraction dim).
        zpad1 = jnp.zeros((CIN1_PAD - C1, HW), jnp.float32)
        zpad2 = jnp.zeros((CIN2_PAD - C2, HW), jnp.float32)

        for b in range(b_blk):                                 # unrolled batch loop
            # ---- first half:  y2 = x2 * expand(scale, 3) + expand(shift, 3) --
            x1_img = x1_ref[b, :, :]                           # (C1, HW)
            hg1 = conv3x3(jnp.concatenate([x1_img, zpad1], axis=0),
                          w1_ref, b1_ref)
            scale1, shift1 = scale_shift(hg1)

            x2_img = x2_ref[b, :, :]                           # (C2, HW)
            # repeat_interleave(REP2, dim=C) realised in registers, single store.
            y2_img = jnp.concatenate(
                [x2_img[co * REP2:(co + 1) * REP2, :] * scale1[co:co + 1, :]
                 + shift1[co:co + 1, :] for co in range(CHANNEL_NUM)], axis=0)
            y2_ref[b, :, :] = y2_img

            # ---- second half: y1 = x1 * expand(scale', 1) + expand(shift', 1) -
            hg2 = conv3x3(jnp.concatenate([y2_img, zpad2], axis=0),
                          w2_ref, b2_ref)
            scale2, shift2 = scale_shift(hg2)
            if REP1 == 1:
                y1_ref[b, :, :] = x1_img * scale2 + shift2
            else:
                y1_ref[b, :, :] = jnp.concatenate(
                    [x1_img[co * REP1:(co + 1) * REP1, :] * scale2[co:co + 1, :]
                     + shift2[co:co + 1, :] for co in range(CHANNEL_NUM)],
                    axis=0)

    return kernel


# ---------------------------------------------------------------------------
# Wrapper: layout plumbing (flatten / tap-major weights / masks) + pallas_call
# ---------------------------------------------------------------------------
def _pack_conv_params(wH, bH, wG, bG, cin_pad, hw):
    # w_taps[tap, o, ci] = w[o, ci, dy+1, dx+1], H stacked on rows 0..2, G on 3..5.
    w = jnp.concatenate([wH, wG], axis=0).astype(jnp.float32)        # (6, cin, 3, 3)
    w = jnp.pad(w, ((0, OUT_PAD - 2 * CHANNEL_NUM),
                    (0, cin_pad - w.shape[1]), (0, 0), (0, 0)))
    w_taps = jnp.transpose(w, (2, 3, 0, 1)).reshape(9, OUT_PAD, cin_pad)
    b = jnp.concatenate([bH.astype(jnp.float32), bG.astype(jnp.float32),
                         jnp.zeros((OUT_PAD - 2 * CHANNEL_NUM,), jnp.float32)])
    b_full = jnp.tile(b[:, None], (1, hw))                           # (OUT_PAD, hw)
    return w_taps, b_full


def _tap_masks(H, W):
    # mask[t, p] = 1.0 iff pixel p's neighbour at offset _TAPS[t] is in-image.
    p = jnp.arange(H * W, dtype=jnp.int32)
    row, col = p // W, p % W
    m = [((row + dy >= 0) & (row + dy < H) & (col + dx >= 0) & (col + dx < W))
         for dy, dx in _TAPS]
    return jnp.stack(m, axis=0).astype(jnp.float32)                  # (9, H*W)


def _pick_batch_block(n, target=8):
    """Largest divisor of n <= target; keep >= 2 grid steps when possible so a
    2-TensorCore part (v7x) can shard the parallel batch axis."""
    divisors = [d for d in range(1, n + 1) if n % d == 0]
    candidates = [d for d in divisors if d <= target] or [1]
    b = max(candidates)
    if n // b < 2:
        two_step = [d for d in candidates if n // d >= 2]
        if two_step:
            b = max(two_step)
    return b


@functools.partial(jax.jit, static_argnames=("clamp",))
def spatial_flow_step_forward(x1, x2, params, clamp=CLAMP):
    """SpatialFlowStep.forward((x1, x2), rev=False, test_mode=False)."""
    N, c1, H, W = x1.shape
    c2 = x2.shape[1]
    hw = H * W
    assert c1 == C1 and c2 == C2, "channel split does not match module config"

    b_blk = _pick_batch_block(N)
    grid = (N // b_blk,)

    x1f = x1.reshape(N, c1, hw).astype(jnp.float32)
    x2f = x2.reshape(N, c2, hw).astype(jnp.float32)

    w1, b1 = _pack_conv_params(params["wH"], params["bH"],
                               params["wG"], params["bG"], CIN1_PAD, hw)
    w2, b2 = _pack_conv_params(params["wHp"], params["bHp"],
                               params["wGp"], params["bGp"], CIN2_PAD, hw)
    masks = _tap_masks(H, W)

    y1f, y2f = pl.pallas_call(
        _make_kernel(H, W, clamp, b_blk),
        out_shape=(jax.ShapeDtypeStruct((N, c1, hw), jnp.float32),
                   jax.ShapeDtypeStruct((N, c2, hw), jnp.float32)),
        grid=grid,
        in_specs=[
            pl.BlockSpec((b_blk, c1, hw), lambda n: (n, 0, 0)),
            pl.BlockSpec((b_blk, c2, hw), lambda n: (n, 0, 0)),
            pl.BlockSpec((9, OUT_PAD, CIN1_PAD), lambda n: (0, 0, 0)),
            pl.BlockSpec((OUT_PAD, hw), lambda n: (0, 0)),
            pl.BlockSpec((9, OUT_PAD, CIN2_PAD), lambda n: (0, 0, 0)),
            pl.BlockSpec((OUT_PAD, hw), lambda n: (0, 0)),
            pl.BlockSpec((9, hw), lambda n: (0, 0)),
        ],
        out_specs=(
            pl.BlockSpec((b_blk, c1, hw), lambda n: (n, 0, 0)),
            pl.BlockSpec((b_blk, c2, hw), lambda n: (n, 0, 0)),
        ),
        compiler_params=pltpu.CompilerParams(
            dimension_semantics=("parallel",)),
    )(x1f, x2f, w1, b1, w2, b2, masks)

    return y1f.reshape(N, c1, H, W), y2f.reshape(N, c2, H, W)


# ---------------------------------------------------------------------------
# Pure-JAX reference (mirrors the PyTorch module) for validation
# ---------------------------------------------------------------------------
def _conv3x3_ref(x, w, b):
    y = lax.conv_general_dilated(x, w, window_strides=(1, 1),
                                 padding=((1, 1), (1, 1)),
                                 dimension_numbers=("NCHW", "OIHW", "NCHW"),
                                 precision=jax.lax.Precision.HIGHEST)
    return y + b[None, :, None, None]


def _expand_ref(x, repeats):
    return x if repeats == 1 else jnp.repeat(x, repeats, axis=1)


def spatial_flow_step_reference(x1, x2, params, clamp=CLAMP):
    scale = jnp.exp(clamp * (jax.nn.sigmoid(_conv3x3_ref(x1, params["wH"], params["bH"])) * 2 - 1))
    shift = _conv3x3_ref(x1, params["wG"], params["bG"])
    y2 = x2 * _expand_ref(scale, REP2) + _expand_ref(shift, REP2)
    scale_p = jnp.exp(clamp * (jax.nn.sigmoid(_conv3x3_ref(y2, params["wHp"], params["bHp"])) * 2 - 1))
    shift_p = _conv3x3_ref(y2, params["wGp"], params["bGp"])
    y1 = x1 * _expand_ref(scale_p, REP1) + _expand_ref(shift_p, REP1)
    return y1, y2


# ---------------------------------------------------------------------------
if __name__ == "__main__":
    key = jax.random.PRNGKey(0)
    ks = jax.random.split(key, 12)

    N, H, W = 4, 16, 16
    params = {
        # subnet G / H  : Conv2d(C1 -> CHANNEL_NUM, 3, pad=1), OIHW weights
        "wG":  0.1 * jax.random.normal(ks[0], (CHANNEL_NUM, C1, 3, 3), jnp.float32),
        "bG":  0.05 * jax.random.normal(ks[1], (CHANNEL_NUM,), jnp.float32),
        "wH":  0.1 * jax.random.normal(ks[2], (CHANNEL_NUM, C1, 3, 3), jnp.float32),
        "bH":  0.05 * jax.random.normal(ks[3], (CHANNEL_NUM,), jnp.float32),
        # subnet G' / H': Conv2d(C2 -> CHANNEL_NUM, 3, pad=1)
        "wGp": 0.1 * jax.random.normal(ks[4], (CHANNEL_NUM, C2, 3, 3), jnp.float32),
        "bGp": 0.05 * jax.random.normal(ks[5], (CHANNEL_NUM,), jnp.float32),
        "wHp": 0.1 * jax.random.normal(ks[6], (CHANNEL_NUM, C2, 3, 3), jnp.float32),
        "bHp": 0.05 * jax.random.normal(ks[7], (CHANNEL_NUM,), jnp.float32),
    }

    x1 = jax.random.normal(ks[8], (N, C1, H, W), jnp.float32)
    x2 = jax.random.normal(ks[9], (N, C2, H, W), jnp.float32)

    y1, y2 = spatial_flow_step_forward(x1, x2, params)
    jax.block_until_ready((y1, y2))

    y1_ref, y2_ref = spatial_flow_step_reference(x1, x2, params)
    # Tolerance allows for default-precision (single-pass bf16, f32 accumulate)
    # MXU matmuls vs. the f32 HIGHEST reference.
    assert jnp.allclose(y2, y2_ref, rtol=2e-2, atol=2e-2), "y2 mismatch"
    assert jnp.allclose(y1, y1_ref, rtol=2e-2, atol=2e-2), "y1 mismatch"

    print("KERNEL_OK")
</pallas_src>

<mosaic_0001>
module attributes {stable_mosaic.version = 11 : i64} {
  func.func @kernel(%arg0: i32, %arg1: memref<2x3x256xf32, #tpu.memory_space<vmem>>, %arg2: memref<2x9x256xf32, #tpu.memory_space<vmem>>, %arg3: memref<9x8x8xf32, #tpu.memory_space<vmem>>, %arg4: memref<8x256xf32, #tpu.memory_space<vmem>>, %arg5: memref<9x8x16xf32, #tpu.memory_space<vmem>>, %arg6: memref<8x256xf32, #tpu.memory_space<vmem>>, %arg7: memref<9x256xf32, #tpu.memory_space<vmem>>, %arg8: memref<2x3x256xf32, #tpu.memory_space<vmem>>, %arg9: memref<2x9x256xf32, #tpu.memory_space<vmem>>) attributes {dimension_semantics = [#tpu.dimension_semantics<parallel>], iteration_bounds = array<i64: 2>, scalar_prefetch = 0 : i64, scratch_operands = 0 : i64, tpu.core_type = #tpu.core_type<tc>, window_params = [{transform_indices = @transform_0, window_bounds = array<i64: 2, 3, 256>}, {transform_indices = @transform_1, window_bounds = array<i64: 2, 9, 256>}, {pipeline_mode = #tpu.pipeline_mode<synchronous>, transform_indices = @transform_2, window_bounds = array<i64: 9, 8, 8>}, {pipeline_mode = #tpu.pipeline_mode<synchronous>, transform_indices = @transform_3, window_bounds = array<i64: 8, 256>}, {pipeline_mode = #tpu.pipeline_mode<synchronous>, transform_indices = @transform_4, window_bounds = array<i64: 9, 8, 16>}, {pipeline_mode = #tpu.pipeline_mode<synchronous>, transform_indices = @transform_5, window_bounds = array<i64: 8, 256>}, {pipeline_mode = #tpu.pipeline_mode<synchronous>, transform_indices = @transform_6, window_bounds = array<i64: 9, 256>}, {transform_indices = @transform_7, window_bounds = array<i64: 2, 3, 256>}, {transform_indices = @transform_8, window_bounds = array<i64: 2, 9, 256>}]} {
    %cst = arith.constant 0.000000e+00 : f32
    %0 = vector.broadcast %cst : f32 to vector<5x256xf32>
    %cst_0 = arith.constant 0.000000e+00 : f32
    %1 = vector.broadcast %cst_0 : f32 to vector<7x256xf32>
    %c0 = arith.constant 0 : index
    %c0_1 = arith.constant 0 : index
    %c0_2 = arith.constant 0 : index
    %2 = vector.load %arg1[%c0, %c0_1, %c0_2] : memref<2x3x256xf32, #tpu.memory_space<vmem>>, vector<1x3x256xf32>
    %3 = vector.shape_cast %2 : vector<1x3x256xf32> to vector<3x256xf32>
    %4 = tpu.concatenate %3, %0 in 0 : vector<3x256xf32>, vector<5x256xf32> -> vector<8x256xf32>
    %c0_3 = arith.constant 0 : index
    %c0_4 = arith.constant 0 : index
    %5 = vector.load %arg4[%c0_3, %c0_4] : memref<8x256xf32, #tpu.memory_space<vmem>>, vector<8x256xf32>
    %c17_i32 = arith.constant 17 : i32
    %6 = tpu.dynamic_rotate %4 by %c17_i32 dim 1 : vector<8x256xf32>, i32 -> vector<8x256xf32>
    %c0_5 = arith.constant 0 : index
    %c0_6 = arith.constant 0 : index
    %c0_7 = arith.constant 0 : index
    %7 = vector.load %arg3[%c0_5, %c0_6, %c0_7] : memref<9x8x8xf32, #tpu.memory_space<vmem>>, vector<1x8x8xf32>
    %8 = vector.shape_cast %7 : vector<1x8x8xf32> to vector<8x8xf32>
    %cst_8 = arith.constant dense<0.000000e+00> : vector<8x256xf32>
    %9 = tpu.matmul %8, %6, %cst_8 {dimension_numbers = #tpu.dot_dimension_numbers<[1], [0], [0], [1], [0, 0, 1, 1], [], []>} : vector<8x8xf32>, vector<8x256xf32>, vector<8x256xf32> -> vector<8x256xf32>
    %c0_9 = arith.constant 0 : index
    %c0_10 = arith.constant 0 : index
    %10 = vector.load %arg7[%c0_9, %c0_10] : memref<9x256xf32, #tpu.memory_space<vmem>>, vector<1x256xf32>
    %11 = vector.broadcast %10 : vector<1x256xf32> to vector<8x256xf32>
    %12 = arith.mulf %9, %11 : vector<8x256xf32>
    %13 = arith.addf %5, %12 : vector<8x256xf32>
    %c16_i32 = arith.constant 16 : i32
    %14 = tpu.dynamic_rotate %4 by %c16_i32 dim 1 : vector<8x256xf32>, i32 -> vector<8x256xf32>
    %c1 = arith.constant 1 : index
    %c0_11 = arith.constant 0 : index
    %c0_12 = arith.constant 0 : index
    %15 = vector.load %arg3[%c1, %c0_11, %c0_12] : memref<9x8x8xf32, #tpu.memory_space<vmem>>, vector<1x8x8xf32>
    %16 = vector.shape_cast %15 : vector<1x8x8xf32> to vector<8x8xf32>
    %cst_13 = arith.constant dense<0.000000e+00> : vector<8x256xf32>
    %17 = tpu.matmul %16, %14, %cst_13 {dimension_numbers = #tpu.dot_dimension_numbers<[1], [0], [0], [1], [0, 0, 1, 1], [], []>} : vector<8x8xf32>, vector<8x256xf32>, vector<8x256xf32> -> vector<8x256xf32>
    %c1_14 = arith.constant 1 : index
    %c0_15 = arith.constant 0 : index
    %18 = vector.load %arg7[%c1_14, %c0_15] : memref<9x256xf32, #tpu.memory_space<vmem>>, vector<1x256xf32>
    %19 = vector.broadcast %18 : vector<1x256xf32> to vector<8x256xf32>
    %20 = arith.mulf %17, %19 : vector<8x256xf32>
    %21 = arith.addf %13, %20 : vector<8x256xf32>
    %c15_i32 = arith.constant 15 : i32
    %22 = tpu.dynamic_rotate %4 by %c15_i32 dim 1 : vector<8x256xf32>, i32 -> vector<8x256xf32>
    %c2 = arith.constant 2 : index
    %c0_16 = arith.constant 0 : index
    %c0_17 = arith.constant 0 : index
    %23 = vector.load %arg3[%c2, %c0_16, %c0_17] : memref<9x8x8xf32, #tpu.memory_space<vmem>>, vector<1x8x8xf32>
    %24 = vector.shape_cast %23 : vector<1x8x8xf32> to vector<8x8xf32>
    %cst_18 = arith.constant dense<0.000000e+00> : vector<8x256xf32>
    %25 = tpu.matmul %24, %22, %cst_18 {dimension_numbers = #tpu.dot_dimension_numbers<[1], [0], [0], [1], [0, 0, 1, 1], [], []>} : vector<8x8xf32>, vector<8x256xf32>, vector<8x256xf32> -> vector<8x256xf32>
    %c2_19 = arith.constant 2 : index
    %c0_20 = arith.constant 0 : index
    %26 = vector.load %arg7[%c2_19, %c0_20] : memref<9x256xf32, #tpu.memory_space<vmem>>, vector<1x256xf32>
    %27 = vector.broadcast %26 : vector<1x256xf32> to vector<8x256xf32>
    %28 = arith.mulf %25, %27 : vector<8x256xf32>
    %29 = arith.addf %21, %28 : vector<8x256xf32>
    %c1_i32 = arith.constant 1 : i32
    %30 = tpu.dynamic_rotate %4 by %c1_i32 dim 1 : vector<8x256xf32>, i32 -> vector<8x256xf32>
    %c3 = arith.constant 3 : index
    %c0_21 = arith.constant 0 : index
    %c0_22 = arith.constant 0 : index
    %31 = vector.load %arg3[%c3, %c0_21, %c0_22] : memref<9x8x8xf32, #tpu.memory_space<vmem>>, vector<1x8x8xf32>
    %32 = vector.shape_cast %31 : vector<1x8x8xf32> to vector<8x8xf32>
    %cst_23 = arith.constant dense<0.000000e+00> : vector<8x256xf32>
    %33 = tpu.matmul %32, %30, %cst_23 {dimension_numbers = #tpu.dot_dimension_numbers<[1], [0], [0], [1], [0, 0, 1, 1], [], []>} : vector<8x8xf32>, vector<8x256xf32>, vector<8x256xf32> -> vector<8x256xf32>
    %c3_24 = arith.constant 3 : index
    %c0_25 = arith.constant 0 : index
    %34 = vector.load %arg7[%c3_24, %c0_25] : memref<9x256xf32, #tpu.memory_space<vmem>>, vector<1x256xf32>
    %35 = vector.broadcast %34 : vector<1x256xf32> to vector<8x256xf32>
    %36 = arith.mulf %33, %35 : vector<8x256xf32>
    %37 = arith.addf %29, %36 : vector<8x256xf32>
    %c4 = arith.constant 4 : index
    %c0_26 = arith.constant 0 : index
    %c0_27 = arith.constant 0 : index
    %38 = vector.load %arg3[%c4, %c0_26, %c0_27] : memref<9x8x8xf32, #tpu.memory_space<vmem>>, vector<1x8x8xf32>
    %39 = vector.shape_cast %38 : vector<1x8x8xf32> to vector<8x8xf32>
    %cst_28 = arith.constant dense<0.000000e+00> : vector<8x256xf32>
    %40 = tpu.matmul %39, %4, %cst_28 {dimension_numbers = #tpu.dot_dimension_numbers<[1], [0], [0], [1], [0, 0, 1, 1], [], []>} : vector<8x8xf32>, vector<8x256xf32>, vector<8x256xf32> -> vector<8x256xf32>
    %41 = arith.addf %37, %40 : vector<8x256xf32>
    %c255_i32 = arith.constant 255 : i32
    %42 = tpu.dynamic_rotate %4 by %c255_i32 dim 1 : vector<8x256xf32>, i32 -> vector<8x256xf32>
    %c5 = arith.constant 5 : index
    %c0_29 = arith.constant 0 : index
    %c0_30 = arith.constant 0 : index
    %43 = vector.load %arg3[%c5, %c0_29, %c0_30] : memref<9x8x8xf32, #tpu.memory_space<vmem>>, vector<1x8x8xf32>
    %44 = vector.shape_cast %43 : vector<1x8x8xf32> to vector<8x8xf32>
    %cst_31 = arith.constant dense<0.000000e+00> : vector<8x256xf32>
    %45 = tpu.matmul %44, %42, %cst_31 {dimension_numbers = #tpu.dot_dimension_numbers<[1], [0], [0], [1], [0, 0, 1, 1], [], []>} : vector<8x8xf32>, vector<8x256xf32>, vector<8x256xf32> -> vector<8x256xf32>
    %c5_32 = arith.constant 5 : index
    %c0_33 = arith.constant 0 : index
    %46 = vector.load %arg7[%c5_32, %c0_33] : memref<9x256xf32, #tpu.memory_space<vmem>>, vector<1x256xf32>
    %47 = vector.broadcast %46 : vector<1x256xf32> to vector<8x256xf32>
    %48 = arith.mulf %45, %47 : vector<8x256xf32>
    %49 = arith.addf %41, %48 : vector<8x256xf32>
    %c241_i32 = arith.constant 241 : i32
    %50 = tpu.dynamic_rotate %4 by %c241_i32 dim 1 : vector<8x256xf32>, i32 -> vector<8x256xf32>
    %c6 = arith.constant 6 : index
    %c0_34 = arith.constant 0 : index
    %c0_35 = arith.constant 0 : index
    %51 = vector.load %arg3[%c6, %c0_34, %c0_35] : memref<9x8x8xf32, #tpu.memory_space<vmem>>, vector<1x8x8xf32>
    %52 = vector.shape_cast %51 : vector<1x8x8xf32> to vector<8x8xf32>
    %cst_36 = arith.constant dense<0.000000e+00> : vector<8x256xf32>
    %53 = tpu.matmul %52, %50, %cst_36 {dimension_numbers = #tpu.dot_dimension_numbers<[1], [0], [0], [1], [0, 0, 1, 1], [], []>} : vector<8x8xf32>, vector<8x256xf32>, vector<8x256xf32> -> vector<8x256xf32>
    %c6_37 = arith.constant 6 : index
    %c0_38 = arith.constant 0 : index
    %54 = vector.load %arg7[%c6_37, %c0_38] : memref<9x256xf32, #tpu.memory_space<vmem>>, vector<1x256xf32>
    %55 = vector.broadcast %54 : vector<1x256xf32> to vector<8x256xf32>
    %56 = arith.mulf %53, %55 : vector<8x256xf32>
    %57 = arith.addf %49, %56 : vector<8x256xf32>
    %c240_i32 = arith.constant 240 : i32
    %58 = tpu.dynamic_rotate %4 by %c240_i32 dim 1 : vector<8x256xf32>, i32 -> vector<8x256xf32>
    %c7 = arith.constant 7 : index
    %c0_39 = arith.constant 0 : index
    %c0_40 = arith.constant 0 : index
    %59 = vector.load %arg3[%c7, %c0_39, %c0_40] : memref<9x8x8xf32, #tpu.memory_space<vmem>>, vector<1x8x8xf32>
    %60 = vector.shape_cast %59 : vector<1x8x8xf32> to vector<8x8xf32>
    %cst_41 = arith.constant dense<0.000000e+00> : vector<8x256xf32>
    %61 = tpu.matmul %60, %58, %cst_41 {dimension_numbers = #tpu.dot_dimension_numbers<[1], [0], [0], [1], [0, 0, 1, 1], [], []>} : vector<8x8xf32>, vector<8x256xf32>, vector<8x256xf32> -> vector<8x256xf32>
    %c7_42 = arith.constant 7 : index
    %c0_43 = arith.constant 0 : index
    %62 = vector.load %arg7[%c7_42, %c0_43] : memref<9x256xf32, #tpu.memory_space<vmem>>, vector<1x256xf32>
    %63 = vector.broadcast %62 : vector<1x256xf32> to vector<8x256xf32>
    %64 = arith.mulf %61, %63 : vector<8x256xf32>
    %65 = arith.addf %57, %64 : vector<8x256xf32>
    %c239_i32 = arith.constant 239 : i32
    %66 = tpu.dynamic_rotate %4 by %c239_i32 dim 1 : vector<8x256xf32>, i32 -> vector<8x256xf32>
    %c8 = arith.constant 8 : index
    %c0_44 = arith.constant 0 : index
    %c0_45 = arith.constant 0 : index
    %67 = vector.load %arg3[%c8, %c0_44, %c0_45] : memref<9x8x8xf32, #tpu.memory_space<vmem>>, vector<1x8x8xf32>
    %68 = vector.shape_cast %67 : vector<1x8x8xf32> to vector<8x8xf32>
    %cst_46 = arith.constant dense<0.000000e+00> : vector<8x256xf32>
    %69 = tpu.matmul %68, %66, %cst_46 {dimension_numbers = #tpu.dot_dimension_numbers<[1], [0], [0], [1], [0, 0, 1, 1], [], []>} : vector<8x8xf32>, vector<8x256xf32>, vector<8x256xf32> -> vector<8x256xf32>
    %c8_47 = arith.constant 8 : index
    %c0_48 = arith.constant 0 : index
    %70 = vector.load %arg7[%c8_47, %c0_48] : memref<9x256xf32, #tpu.memory_space<vmem>>, vector<1x256xf32>
    %71 = vector.broadcast %70 : vector<1x256xf32> to vector<8x256xf32>
    %72 = arith.mulf %69, %71 : vector<8x256xf32>
    %73 = arith.addf %65, %72 : vector<8x256xf32>
    %74 = vector.extract_strided_slice %73 {offsets = [0, 0], sizes = [3, 256], strides = [1, 1]} : vector<8x256xf32> to vector<3x256xf32>
    %75 = vector.extract_strided_slice %73 {offsets = [3, 0], sizes = [3, 256], strides = [1, 1]} : vector<8x256xf32> to vector<3x256xf32>
    %cst_49 = arith.constant 5.000000e-01 : f32
    %76 = vector.broadcast %cst_49 : f32 to vector<3x256xf32>
    %77 = arith.mulf %76, %74 : vector<3x256xf32>
    %78 = math.tanh %77 : vector<3x256xf32>
    %cst_50 = arith.constant 8.000000e-01 : f32
    %79 = vector.broadcast %cst_50 : f32 to vector<3x256xf32>
    %80 = arith.mulf %79, %78 : vector<3x256xf32>
    %81 = math.exp %80 : vector<3x256xf32>
    %c0_51 = arith.constant 0 : index
    %c0_52 = arith.constant 0 : index
    %c0_53 = arith.constant 0 : index
    %82 = vector.load %arg2[%c0_51, %c0_52, %c0_53] : memref<2x9x256xf32, #tpu.memory_space<vmem>>, vector<1x9x256xf32>
    %83 = vector.shape_cast %82 : vector<1x9x256xf32> to vector<9x256xf32>
    %84 = vector.extract_strided_slice %83 {offsets = [0, 0], sizes = [3, 256], strides = [1, 1]} : vector<9x256xf32> to vector<3x256xf32>
    %85 = vector.extract_strided_slice %81 {offsets = [0, 0], sizes = [1, 256], strides = [1, 1]} : vector<3x256xf32> to vector<1x256xf32>
    %86 = vector.broadcast %85 : vector<1x256xf32> to vector<3x256xf32>
    %87 = arith.mulf %84, %86 : vector<3x256xf32>
    %88 = vector.extract_strided_slice %75 {offsets = [0, 0], sizes = [1, 256], strides = [1, 1]} : vector<3x256xf32> to vector<1x256xf32>
    %89 = vector.broadcast %88 : vector<1x256xf32> to vector<3x256xf32>
    %90 = arith.addf %87, %89 : vector<3x256xf32>
    %91 = vector.extract_strided_slice %83 {offsets = [3, 0], sizes = [3, 256], strides = [1, 1]} : vector<9x256xf32> to vector<3x256xf32>
    %92 = vector.extract_strided_slice %81 {offsets = [1, 0], sizes = [1, 256], strides = [1, 1]} : vector<3x256xf32> to vector<1x256xf32>
    %93 = vector.broadcast %92 : vector<1x256xf32> to vector<3x256xf32>
    %94 = arith.mulf %91, %93 : vector<3x256xf32>
    %95 = vector.extract_strided_slice %75 {offsets = [1, 0], sizes = [1, 256], strides = [1, 1]} : vector<3x256xf32> to vector<1x256xf32>
    %96 = vector.broadcast %95 : vector<1x256xf32> to vector<3x256xf32>
    %97 = arith.addf %94, %96 : vector<3x256xf32>
    %98 = vector.extract_strided_slice %83 {offsets = [6, 0], sizes = [3, 256], strides = [1, 1]} : vector<9x256xf32> to vector<3x256xf32>
    %99 = vector.extract_strided_slice %81 {offsets = [2, 0], sizes = [1, 256], strides = [1, 1]} : vector<3x256xf32> to vector<1x256xf32>
    %100 = vector.broadcast %99 : vector<1x256xf32> to vector<3x256xf32>
    %101 = arith.mulf %98, %100 : vector<3x256xf32>
    %102 = vector.extract_strided_slice %75 {offsets = [2, 0], sizes = [1, 256], strides = [1, 1]} : vector<3x256xf32> to vector<1x256xf32>
    %103 = vector.broadcast %102 : vector<1x256xf32> to vector<3x256xf32>
    %104 = arith.addf %101, %103 : vector<3x256xf32>
    %105 = tpu.concatenate %90, %97, %104 in 0 : vector<3x256xf32>, vector<3x256xf32>, vector<3x256xf32> -> vector<9x256xf32>
    %c0_54 = arith.constant 0 : index
    %c0_55 = arith.constant 0 : index
    %c0_56 = arith.constant 0 : index
    %106 = vector.load %arg9[%c0_54, %c0_55, %c0_56] : memref<2x9x256xf32, #tpu.memory_space<vmem>>, vector<1x9x256xf32>
    %107 = vector.shape_cast %106 : vector<1x9x256xf32> to vector<9x256xf32>
    %108 = vector.shape_cast %105 : vector<9x256xf32> to vector<1x9x256xf32>
    tpu.vector_store %arg9[%c0_54, %c0_55, %c0_56], %108 {strides = array<i32>} : memref<2x9x256xf32, #tpu.memory_space<vmem>>, vector<1x9x256xf32>,
    %109 = tpu.concatenate %105, %1 in 0 : vector<9x256xf32>, vector<7x256xf32> -> vector<16x256xf32>
    %c0_57 = arith.constant 0 : index
    %c0_58 = arith.constant 0 : index
    %110 = vector.load %arg6[%c0_57, %c0_58] : memref<8x256xf32, #tpu.memory_space<vmem>>, vector<8x256xf32>
    %c17_i32_59 = arith.constant 17 : i32
    %111 = tpu.dynamic_rotate %109 by %c17_i32_59 dim 1 : vector<16x256xf32>, i32 -> vector<16x256xf32>
    %c0_60 = arith.constant 0 : index
    %c0_61 = arith.constant 0 : index
    %c0_62 = arith.constant 0 : index
    %112 = vector.load %arg5[%c0_60, %c0_61, %c0_62] : memref<9x8x16xf32, #tpu.memory_space<vmem>>, vector<1x8x16xf32>
    %113 = vector.shape_cast %112 : vector<1x8x16xf32> to vector<8x16xf32>
    %cst_63 = arith.constant dense<0.000000e+00> : vector<8x256xf32>
    %114 = tpu.matmul %113, %111, %cst_63 {dimension_numbers = #tpu.dot_dimension_numbers<[1], [0], [0], [1], [0, 0, 1, 1], [], []>} : vector<8x16xf32>, vector<16x256xf32>, vector<8x256xf32> -> vector<8x256xf32>
    %c0_64 = arith.constant 0 : index
    %c0_65 = arith.constant 0 : index
    %115 = vector.load %arg7[%c0_64, %c0_65] : memref<9x256xf32, #tpu.memory_space<vmem>>, vector<1x256xf32>
    %116 = vector.broadcast %115 : vector<1x256xf32> to vector<8x256xf32>
    %117 = arith.mulf %114, %116 : vector<8x256xf32>
    %118 = arith.addf %110, %117 : vector<8x256xf32>
    %c16_i32_66 = arith.constant 16 : i32
    %119 = tpu.dynamic_rotate %109 by %c16_i32_66 dim 1 : vector<16x256xf32>, i32 -> vector<16x256xf32>
    %c1_67 = arith.constant 1 : index
    %c0_68 = arith.constant 0 : index
    %c0_69 = arith.constant 0 : index
    %120 = vector.load %arg5[%c1_67, %c0_68, %c0_69] : memref<9x8x16xf32, #tpu.memory_space<vmem>>, vector<1x8x16xf32>
    %121 = vector.shape_cast %120 : vector<1x8x16xf32> to vector<8x16xf32>
    %cst_70 = arith.constant dense<0.000000e+00> : vector<8x256xf32>
    %122 = tpu.matmul %121, %119, %cst_70 {dimension_numbers = #tpu.dot_dimension_numbers<[1], [0], [0], [1], [0, 0, 1, 1], [], []>} : vector<8x16xf32>, vector<16x256xf32>, vector<8x256xf32> -> vector<8x256xf32>
    %c1_71 = arith.constant 1 : index
    %c0_72 = arith.constant 0 : index
    %123 = vector.load %arg7[%c1_71, %c0_72] : memref<9x256xf32, #tpu.memory_space<vmem>>, vector<1x256xf32>
    %124 = vector.broadcast %123 : vector<1x256xf32> to vector<8x256xf32>
    %125 = arith.mulf %122, %124 : vector<8x256xf32>
    %126 = arith.addf %118, %125 : vector<8x256xf32>
    %c15_i32_73 = arith.constant 15 : i32
    %127 = tpu.dynamic_rotate %109 by %c15_i32_73 dim 1 : vector<16x256xf32>, i32 -> vector<16x256xf32>
    %c2_74 = arith.constant 2 : index
    %c0_75 = arith.constant 0 : index
    %c0_76 = arith.constant 0 : index
    %128 = vector.load %arg5[%c2_74, %c0_75, %c0_76] : memref<9x8x16xf32, #tpu.memory_space<vmem>>, vector<1x8x16xf32>
    %129 = vector.shape_cast %128 : vector<1x8x16xf32> to vector<8x16xf32>
    %cst_77 = arith.constant dense<0.000000e+00> : vector<8x256xf32>
    %130 = tpu.matmul %129, %127, %cst_77 {dimension_numbers = #tpu.dot_dimension_numbers<[1], [0], [0], [1], [0, 0, 1, 1], [], []>} : vector<8x16xf32>, vector<16x256xf32>, vector<8x256xf32> -> vector<8x256xf32>
    %c2_78 = arith.constant 2 : index
    %c0_79 = arith.constant 0 : index
    %131 = vector.load %arg7[%c2_78, %c0_79] : memref<9x256xf32, #tpu.memory_space<vmem>>, vector<1x256xf32>
    %132 = vector.broadcast %131 : vector<1x256xf32> to vector<8x256xf32>
    %133 = arith.mulf %130, %132 : vector<8x256xf32>
    %134 = arith.addf %126, %133 : vector<8x256xf32>
    %c1_i32_80 = arith.constant 1 : i32
    %135 = tpu.dynamic_rotate %109 by %c1_i32_80 dim 1 : vector<16x256xf32>, i32 -> vector<16x256xf32>
    %c3_81 = arith.constant 3 : index
    %c0_82 = arith.constant 0 : index
    %c0_83 = arith.constant 0 : index
    %136 = vector.load %arg5[%c3_81, %c0_82, %c0_83] : memref<9x8x16xf32, #tpu.memory_space<vmem>>, vector<1x8x16xf32>
    %137 = vector.shape_cast %136 : vector<1x8x16xf32> to vector<8x16xf32>
    %cst_84 = arith.constant dense<0.000000e+00> : vector<8x256xf32>
    %138 = tpu.matmul %137, %135, %cst_84 {dimension_numbers = #tpu.dot_dimension_numbers<[1], [0], [0], [1], [0, 0, 1, 1], [], []>} : vector<8x16xf32>, vector<16x256xf32>, vector<8x256xf32> -> vector<8x256xf32>
    %c3_85 = arith.constant 3 : index
    %c0_86 = arith.constant 0 : index
    %139 = vector.load %arg7[%c3_85, %c0_86] : memref<9x256xf32, #tpu.memory_space<vmem>>, vector<1x256xf32>
    %140 = vector.broadcast %139 : vector<1x256xf32> to vector<8x256xf32>
    %141 = arith.mulf %138, %140 : vector<8x256xf32>
    %142 = arith.addf %134, %141 : vector<8x256xf32>
    %c4_87 = arith.constant 4 : index
    %c0_88 = arith.constant 0 : index
    %c0_89 = arith.constant 0 : index
    %143 = vector.load %arg5[%c4_87, %c0_88, %c0_89] : memref<9x8x16xf32, #tpu.memory_space<vmem>>, vector<1x8x16xf32>
    %144 = vector.shape_cast %143 : vector<1x8x16xf32> to vector<8x16xf32>
    %cst_90 = arith.constant dense<0.000000e+00> : vector<8x256xf32>
    %145 = tpu.matmul %144, %109, %cst_90 {dimension_numbers = #tpu.dot_dimension_numbers<[1], [0], [0], [1], [0, 0, 1, 1], [], []>} : vector<8x16xf32>, vector<16x256xf32>, vector<8x256xf32> -> vector<8x256xf32>
    %146 = arith.addf %142, %145 : vector<8x256xf32>
    %c255_i32_91 = arith.constant 255 : i32
    %147 = tpu.dynamic_rotate %109 by %c255_i32_91 dim 1 : vector<16x256xf32>, i32 -> vector<16x256xf32>
    %c5_92 = arith.constant 5 : index
    %c0_93 = arith.constant 0 : index
    %c0_94 = arith.constant 0 : index
    %148 = vector.load %arg5[%c5_92, %c0_93, %c0_94] : memref<9x8x16xf32, #tpu.memory_space<vmem>>, vector<1x8x16xf32>
    %149 = vector.shape_cast %148 : vector<1x8x16xf32> to vector<8x16xf32>
    %cst_95 = arith.constant dense<0.000000e+00> : vector<8x256xf32>
    %150 = tpu.matmul %149, %147, %cst_95 {dimension_numbers = #tpu.dot_dimension_numbers<[1], [0], [0], [1], [0, 0, 1, 1], [], []>} : vector<8x16xf32>, vector<16x256xf32>, vector<8x256xf32> -> vector<8x256xf32>
    %c5_96 = arith.constant 5 : index
    %c0_97 = arith.constant 0 : index
    %151 = vector.load %arg7[%c5_96, %c0_97] : memref<9x256xf32, #tpu.memory_space<vmem>>, vector<1x256xf32>
    %152 = vector.broadcast %151 : vector<1x256xf32> to vector<8x256xf32>
    %153 = arith.mulf %150, %152 : vector<8x256xf32>
    %154 = arith.addf %146, %153 : vector<8x256xf32>
    %c241_i32_98 = arith.constant 241 : i32
    %155 = tpu.dynamic_rotate %109 by %c241_i32_98 dim 1 : vector<16x256xf32>, i32 -> vector<16x256xf32>
    %c6_99 = arith.constant 6 : index
    %c0_100 = arith.constant 0 : index
    %c0_101 = arith.constant 0 : index
    %156 = vector.load %arg5[%c6_99, %c0_100, %c0_101] : memref<9x8x16xf32, #tpu.memory_space<vmem>>, vector<1x8x16xf32>
    %157 = vector.shape_cast %156 : vector<1x8x16xf32> to vector<8x16xf32>
    %cst_102 = arith.constant dense<0.000000e+00> : vector<8x256xf32>
    %158 = tpu.matmul %157, %155, %cst_102 {dimension_numbers = #tpu.dot_dimension_numbers<[1], [0], [0], [1], [0, 0, 1, 1], [], []>} : vector<8x16xf32>, vector<16x256xf32>, vector<8x256xf32> -> vector<8x256xf32>
    %c6_103 = arith.constant 6 : index
    %c0_104 = arith.constant 0 : index
    %159 = vector.load %arg7[%c6_103, %c0_104] : memref<9x256xf32, #tpu.memory_space<vmem>>, vector<1x256xf32>
    %160 = vector.broadcast %159 : vector<1x256xf32> to vector<8x256xf32>
    %161 = arith.mulf %158, %160 : vector<8x256xf32>
    %162 = arith.addf %154, %161 : vector<8x256xf32>
    %c240_i32_105 = arith.constant 240 : i32
    %163 = tpu.dynamic_rotate %109 by %c240_i32_105 dim 1 : vector<16x256xf32>, i32 -> vector<16x256xf32>
    %c7_106 = arith.constant 7 : index
    %c0_107 = arith.constant 0 : index
    %c0_108 = arith.constant 0 : index
    %164 = vector.load %arg5[%c7_106, %c0_107, %c0_108] : memref<9x8x16xf32, #tpu.memory_space<vmem>>, vector<1x8x16xf32>
    %165 = vector.shape_cast %164 : vector<1x8x16xf32> to vector<8x16xf32>
    %cst_109 = arith.constant dense<0.000000e+00> : vector<8x256xf32>
    %166 = tpu.matmul %165, %163, %cst_109 {dimension_numbers = #tpu.dot_dimension_numbers<[1], [0], [0], [1], [0, 0, 1, 1], [], []>} : vector<8x16xf32>, vector<16x256xf32>, vector<8x256xf32> -> vector<8x256xf32>
    %c7_110 = arith.constant 7 : index
    %c0_111 = arith.constant 0 : index
    %167 = vector.load %arg7[%c7_110, %c0_111] : memref<9x256xf32, #tpu.memory_space<vmem>>, vector<1x256xf32>
    %168 = vector.broadcast %167 : vector<1x256xf32> to vector<8x256xf32>
    %169 = arith.mulf %166, %168 : vector<8x256xf32>
    %170 = arith.addf %162, %169 : vector<8x256xf32>
    %c239_i32_112 = arith.constant 239 : i32
    %171 = tpu.dynamic_rotate %109 by %c239_i32_112 dim 1 : vector<16x256xf32>, i32 -> vector<16x256xf32>
    %c8_113 = arith.constant 8 : index
    %c0_114 = arith.constant 0 : index
    %c0_115 = arith.constant 0 : index
    %172 = vector.load %arg5[%c8_113, %c0_114, %c0_115] : memref<9x8x16xf32, #tpu.memory_space<vmem>>, vector<1x8x16xf32>
    %173 = vector.shape_cast %172 : vector<1x8x16xf32> to vector<8x16xf32>
    %cst_116 = arith.constant dense<0.000000e+00> : vector<8x256xf32>
    %174 = tpu.matmul %173, %171, %cst_116 {dimension_numbers = #tpu.dot_dimension_numbers<[1], [0], [0], [1], [0, 0, 1, 1], [], []>} : vector<8x16xf32>, vector<16x256xf32>, vector<8x256xf32> -> vector<8x256xf32>
    %c8_117 = arith.constant 8 : index
    %c0_118 = arith.constant 0 : index
    %175 = vector.load %arg7[%c8_117, %c0_118] : memref<9x256xf32, #tpu.memory_space<vmem>>, vector<1x256xf32>
    %176 = vector.broadcast %175 : vector<1x256xf32> to vector<8x256xf32>
    %177 = arith.mulf %174, %176 : vector<8x256xf32>
    %178 = arith.addf %170, %177 : vector<8x256xf32>
    %179 = vector.extract_strided_slice %178 {offsets = [0, 0], sizes = [3, 256], strides = [1, 1]} : vector<8x256xf32> to vector<3x256xf32>
    %180 = vector.extract_strided_slice %178 {offsets = [3, 0], sizes = [3, 256], strides = [1, 1]} : vector<8x256xf32> to vector<3x256xf32>
    %cst_119 = arith.constant 5.000000e-01 : f32
    %181 = vector.broadcast %cst_119 : f32 to vector<3x256xf32>
    %182 = arith.mulf %181, %179 : vector<3x256xf32>
    %183 = math.tanh %182 : vector<3x256xf32>
    %cst_120 = arith.constant 8.000000e-01 : f32
    %184 = vector.broadcast %cst_120 : f32 to vector<3x256xf32>
    %185 = arith.mulf %184, %183 : vector<3x256xf32>
    %186 = math.exp %185 : vector<3x256xf32>
    %187 = arith.mulf %3, %186 : vector<3x256xf32>
    %188 = arith.addf %187, %180 : vector<3x256xf32>
    %c0_121 = arith.constant 0 : index
    %c0_122 = arith.constant 0 : index
    %c0_123 = arith.constant 0 : index
    %189 = vector.load %arg8[%c0_121, %c0_122, %c0_123] : memref<2x3x256xf32, #tpu.memory_space<vmem>>, vector<1x3x256xf32>
    %190 = vector.shape_cast %189 : vector<1x3x256xf32> to vector<3x256xf32>
    %191 = vector.shape_cast %188 : vector<3x256xf32> to vector<1x3x256xf32>
    tpu.vector_store %arg8[%c0_121, %c0_122, %c0_123], %191 {strides = array<i32>} : memref<2x3x256xf32, #tpu.memory_space<vmem>>, vector<1x3x256xf32>,
    %c1_124 = arith.constant 1 : index
    %c0_125 = arith.constant 0 : index
    %c0_126 = arith.constant 0 : index
    %192 = vector.load %arg1[%c1_124, %c0_125, %c0_126] : memref<2x3x256xf32, #tpu.memory_space<vmem>>, vector<1x3x256xf32>
    %193 = vector.shape_cast %192 : vector<1x3x256xf32> to vector<3x256xf32>
    %194 = tpu.concatenate %193, %0 in 0 : vector<3x256xf32>, vector<5x256xf32> -> vector<8x256xf32>
    %c0_127 = arith.constant 0 : index
    %c0_128 = arith.constant 0 : index
    %195 = vector.load %arg4[%c0_127, %c0_128] : memref<8x256xf32, #tpu.memory_space<vmem>>, vector<8x256xf32>
    %c17_i32_129 = arith.constant 17 : i32
    %196 = tpu.dynamic_rotate %194 by %c17_i32_129 dim 1 : vector<8x256xf32>, i32 -> vector<8x256xf32>
    %c0_130 = arith.constant 0 : index
    %c0_131 = arith.constant 0 : index
    %c0_132 = arith.constant 0 : index
    %197 = vector.load %arg3[%c0_130, %c0_131, %c0_132] : memref<9x8x8xf32, #tpu.memory_space<vmem>>, vector<1x8x8xf32>
    %198 = vector.shape_cast %197 : vector<1x8x8xf32> to vector<8x8xf32>
    %cst_133 = arith.constant dense<0.000000e+00> : vector<8x256xf32>
    %199 = tpu.matmul %198, %196, %cst_133 {dimension_numbers = #tpu.dot_dimension_numbers<[1], [0], [0], [1], [0, 0, 1, 1], [], []>} : vector<8x8xf32>, vector<8x256xf32>, vector<8x256xf32> -> vector<8x256xf32>
    %c0_134 = arith.constant 0 : index
    %c0_135 = arith.constant 0 : index
    %200 = vector.load %arg7[%c0_134, %c0_135] : memref<9x256xf32, #tpu.memory_space<vmem>>, vector<1x256xf32>
    %201 = vector.broadcast %200 : vector<1x256xf32> to vector<8x256xf32>
    %202 = arith.mulf %199, %201 : vector<8x256xf32>
    %203 = arith.addf %195, %202 : vector<8x256xf32>
    %c16_i32_136 = arith.constant 16 : i32
    %204 = tpu.dynamic_rotate %194 by %c16_i32_136 dim 1 : vector<8x256xf32>, i32 -> vector<8x256xf32>
    %c1_137 = arith.constant 1 : index
    %c0_138 = arith.constant 0 : index
    %c0_139 = arith.constant 0 : index
    %205 = vector.load %arg3[%c1_137, %c0_138, %c0_139] : memref<9x8x8xf32, #tpu.memory_space<vmem>>, vector<1x8x8xf32>
    %206 = vector.shape_cast %205 : vector<1x8x8xf32> to vector<8x8xf32>
    %cst_140 = arith.constant dense<0.000000e+00> : vector<8x256xf32>
    %207 = tpu.matmul %206, %204, %cst_140 {dimension_numbers = #tpu.dot_dimension_numbers<[1], [0], [0], [1], [0, 0, 1, 1], [], []>} : vector<8x8xf32>, vector<8x256xf32>, vector<8x256xf32> -> vector<8x256xf32>
    %c1_141 = arith.constant 1 : index
    %c0_142 = arith.constant 0 : index
    %208 = vector.load %arg7[%c1_141, %c0_142] : memref<9x256xf32, #tpu.memory_space<vmem>>, vector<1x256xf32>
    %209 = vector.broadcast %208 : vector<1x256xf32> to vector<8x256xf32>
    %210 = arith.mulf %207, %209 : vector<8x256xf32>
    %211 = arith.addf %203, %210 : vector<8x256xf32>
    %c15_i32_143 = arith.constant 15 : i32
    %212 = tpu.dynamic_rotate %194 by %c15_i32_143 dim 1 : vector<8x256xf32>, i32 -> vector<8x256xf32>
    %c2_144 = arith.constant 2 : index
    %c0_145 = arith.constant 0 : index
    %c0_146 = arith.constant 0 : index
    %213 = vector.load %arg3[%c2_144, %c0_145, %c0_146] : memref<9x8x8xf32, #tpu.memory_space<vmem>>, vector<1x8x8xf32>
    %214 = vector.shape_cast %213 : vector<1x8x8xf32> to vector<8x8xf32>
    %cst_147 = arith.constant dense<0.000000e+00> : vector<8x256xf32>
    %215 = tpu.matmul %214, %212, %cst_147 {dimension_numbers = #tpu.dot_dimension_numbers<[1], [0], [0], [1], [0, 0, 1, 1], [], []>} : vector<8x8xf32>, vector<8x256xf32>, vector<8x256xf32> -> vector<8x256xf32>
    %c2_148 = arith.constant 2 : index
    %c0_149 = arith.constant 0 : index
    %216 = vector.load %arg7[%c2_148, %c0_149] : memref<9x256xf32, #tpu.memory_space<vmem>>, vector<1x256xf32>
    %217 = vector.broadcast %216 : vector<1x256xf32> to vector<8x256xf32>
    %218 = arith.mulf %215, %217 : vector<8x256xf32>
    %219 = arith.addf %211, %218 : vector<8x256xf32>
    %c1_i32_150 = arith.constant 1 : i32
    %220 = tpu.dynamic_rotate %194 by %c1_i32_150 dim 1 : vector<8x256xf32>, i32 -> vector<8x256xf32>
    %c3_151 = arith.constant 3 : index
    %c0_152 = arith.constant 0 : index
    %c0_153 = arith.constant 0 : index
    %221 = vector.load %arg3[%c3_151, %c0_152, %c0_153] : memref<9x8x8xf32, #tpu.memory_space<vmem>>, vector<1x8x8xf32>
    %222 = vector.shape_cast %221 : vector<1x8x8xf32> to vector<8x8xf32>
    %cst_154 = arith.constant dense<0.000000e+00> : vector<8x256xf32>
    %223 = tpu.matmul %222, %220, %cst_154 {dimension_numbers = #tpu.dot_dimension_numbers<[1], [0], [0], [1], [0, 0, 1, 1], [], []>} : vector<8x8xf32>, vector<8x256xf32>, vector<8x256xf32> -> vector<8x256xf32>
    %c3_155 = arith.constant 3 : index
    %c0_156 = arith.constant 0 : index
    %224 = vector.load %arg7[%c3_155, %c0_156] : memref<9x256xf32, #tpu.memory_space<vmem>>, vector<1x256xf32>
    %225 = vector.broadcast %224 : vector<1x256xf32> to vector<8x256xf32>
    %226 = arith.mulf %223, %225 : vector<8x256xf32>
    %227 = arith.addf %219, %226 : vector<8x256xf32>
    %c4_157 = arith.constant 4 : index
    %c0_158 = arith.constant 0 : index
    %c0_159 = arith.constant 0 : index
    %228 = vector.load %arg3[%c4_157, %c0_158, %c0_159] : memref<9x8x8xf32, #tpu.memory_space<vmem>>, vector<1x8x8xf32>
    %229 = vector.shape_cast %228 : vector<1x8x8xf32> to vector<8x8xf32>
    %cst_160 = arith.constant dense<0.000000e+00> : vector<8x256xf32>
    %230 = tpu.matmul %229, %194, %cst_160 {dimension_numbers = #tpu.dot_dimension_numbers<[1], [0], [0], [1], [0, 0, 1, 1], [], []>} : vector<8x8xf32>, vector<8x256xf32>, vector<8x256xf32> -> vector<8x256xf32>
    %231 = arith.addf %227, %230 : vector<8x256xf32>
    %c255_i32_161 = arith.constant 255 : i32
    %232 = tpu.dynamic_rotate %194 by %c255_i32_161 dim 1 : vector<8x256xf32>, i32 -> vector<8x256xf32>
    %c5_162 = arith.constant 5 : index
    %c0_163 = arith.constant 0 : index
    %c0_164 = arith.constant 0 : index
    %233 = vector.load %arg3[%c5_162, %c0_163, %c0_164] : memref<9x8x8xf32, #tpu.memory_space<vmem>>, vector<1x8x8xf32>
    %234 = vector.shape_cast %233 : vector<1x8x8xf32> to vector<8x8xf32>
    %cst_165 = arith.constant dense<0.000000e+00> : vector<8x256xf32>
    %235 = tpu.matmul %234, %232, %cst_165 {dimension_numbers = #tpu.dot_dimension_numbers<[1], [0], [0], [1], [0, 0, 1, 1], [], []>} : vector<8x8xf32>, vector<8x256xf32>, vector<8x256xf32> -> vector<8x256xf32>
    %c5_166 = arith.constant 5 : index
    %c0_167 = arith.constant 0 : index
    %236 = vector.load %arg7[%c5_166, %c0_167] : memref<9x256xf32, #tpu.memory_space<vmem>>, vector<1x256xf32>
    %237 = vector.broadcast %236 : vector<1x256xf32> to vector<8x256xf32>
    %238 = arith.mulf %235, %237 : vector<8x256xf32>
    %239 = arith.addf %231, %238 : vector<8x256xf32>
    %c241_i32_168 = arith.constant 241 : i32
    %240 = tpu.dynamic_rotate %194 by %c241_i32_168 dim 1 : vector<8x256xf32>, i32 -> vector<8x256xf32>
    %c6_169 = arith.constant 6 : index
    %c0_170 = arith.constant 0 : index
    %c0_171 = arith.constant 0 : index
    %241 = vector.load %arg3[%c6_169, %c0_170, %c0_171] : memref<9x8x8xf32, #tpu.memory_space<vmem>>, vector<1x8x8xf32>
    %242 = vector.shape_cast %241 : vector<1x8x8xf32> to vector<8x8xf32>
    %cst_172 = arith.constant dense<0.000000e+00> : vector<8x256xf32>
    %243 = tpu.matmul %242, %240, %cst_172 {dimension_numbers = #tpu.dot_dimension_numbers<[1], [0], [0], [1], [0, 0, 1, 1], [], []>} : vector<8x8xf32>, vector<8x256xf32>, vector<8x256xf32> -> vector<8x256xf32>
    %c6_173 = arith.constant 6 : index
    %c0_174 = arith.constant 0 : index
    %244 = vector.load %arg7[%c6_173, %c0_174] : memref<9x256xf32, #tpu.memory_space<vmem>>, vector<1x256xf32>
    %245 = vector.broadcast %244 : vector<1x256xf32> to vector<8x256xf32>
    %246 = arith.mulf %243, %245 : vector<8x256xf32>
    %247 = arith.addf %239, %246 : vector<8x256xf32>
    %c240_i32_175 = arith.constant 240 : i32
    %248 = tpu.dynamic_rotate %194 by %c240_i32_175 dim 1 : vector<8x256xf32>, i32 -> vector<8x256xf32>
    %c7_176 = arith.constant 7 : index
    %c0_177 = arith.constant 0 : index
    %c0_178 = arith.constant 0 : index
    %249 = vector.load %arg3[%c7_176, %c0_177, %c0_178] : memref<9x8x8xf32, #tpu.memory_space<vmem>>, vector<1x8x8xf32>
    %250 = vector.shape_cast %249 : vector<1x8x8xf32> to vector<8x8xf32>
    %cst_179 = arith.constant dense<0.000000e+00> : vector<8x256xf32>
    %251 = tpu.matmul %250, %248, %cst_179 {dimension_numbers = #tpu.dot_dimension_numbers<[1], [0], [0], [1], [0, 0, 1, 1], [], []>} : vector<8x8xf32>, vector<8x256xf32>, vector<8x256xf32> -> vector<8x256xf32>
    %c7_180 = arith.constant 7 : index
    %c0_181 = arith.constant 0 : index
    %252 = vector.load %arg7[%c7_180, %c0_181] : memref<9x256xf32, #tpu.memory_space<vmem>>, vector<1x256xf32>
    %253 = vector.broadcast %252 : vector<1x256xf32> to vector<8x256xf32>
    %254 = arith.mulf %251, %253 : vector<8x256xf32>
    %255 = arith.addf %247, %254 : vector<8x256xf32>
    %c239_i32_182 = arith.constant 239 : i32
    %256 = tpu.dynamic_rotate %194 by %c239_i32_182 dim 1 : vector<8x256xf32>, i32 -> vector<8x256xf32>
    %c8_183 = arith.constant 8 : index
    %c0_184 = arith.constant 0 : index
    %c0_185 = arith.constant 0 : index
    %257 = vector.load %arg3[%c8_183, %c0_184, %c0_185] : memref<9x8x8xf32, #tpu.memory_space<vmem>>, vector<1x8x8xf32>
    %258 = vector.shape_cast %257 : vector<1x8x8xf32> to vector<8x8xf32>
    %cst_186 = arith.constant dense<0.000000e+00> : vector<8x256xf32>
    %259 = tpu.matmul %258, %256, %cst_186 {dimension_numbers = #tpu.dot_dimension_numbers<[1], [0], [0], [1], [0, 0, 1, 1], [], []>} : vector<8x8xf32>, vector<8x256xf32>, vector<8x256xf32> -> vector<8x256xf32>
    %c8_187 = arith.constant 8 : index
    %c0_188 = arith.constant 0 : index
    %260 = vector.load %arg7[%c8_187, %c0_188] : memref<9x256xf32, #tpu.memory_space<vmem>>, vector<1x256xf32>
    %261 = vector.broadcast %260 : vector<1x256xf32> to vector<8x256xf32>
    %262 = arith.mulf %259, %261 : vector<8x256xf32>
    %263 = arith.addf %255, %262 : vector<8x256xf32>
    %264 = vector.extract_strided_slice %263 {offsets = [0, 0], sizes = [3, 256], strides = [1, 1]} : vector<8x256xf32> to vector<3x256xf32>
    %265 = vector.extract_strided_slice %263 {offsets = [3, 0], sizes = [3, 256], strides = [1, 1]} : vector<8x256xf32> to vector<3x256xf32>
    %cst_189 = arith.constant 5.000000e-01 : f32
    %266 = vector.broadcast %cst_189 : f32 to vector<3x256xf32>
    %267 = arith.mulf %266, %264 : vector<3x256xf32>
    %268 = math.tanh %267 : vector<3x256xf32>
    %cst_190 = arith.constant 8.000000e-01 : f32
    %269 = vector.broadcast %cst_190 : f32 to vector<3x256xf32>
    %270 = arith.mulf %269, %268 : vector<3x256xf32>
    %271 = math.exp %270 : vector<3x256xf32>
    %c1_191 = arith.constant 1 : index
    %c0_192 = arith.constant 0 : index
    %c0_193 = arith.constant 0 : index
    %272 = vector.load %arg2[%c1_191, %c0_192, %c0_193] : memref<2x9x256xf32, #tpu.memory_space<vmem>>, vector<1x9x256xf32>
    %273 = vector.shape_cast %272 : vector<1x9x256xf32> to vector<9x256xf32>
    %274 = vector.extract_strided_slice %273 {offsets = [0, 0], sizes = [3, 256], strides = [1, 1]} : vector<9x256xf32> to vector<3x256xf32>
    %275 = vector.extract_strided_slice %271 {offsets = [0, 0], sizes = [1, 256], strides = [1, 1]} : vector<3x256xf32> to vector<1x256xf32>
    %276 = vector.broadcast %275 : vector<1x256xf32> to vector<3x256xf32>
    %277 = arith.mulf %274, %276 : vector<3x256xf32>
    %278 = vector.extract_strided_slice %265 {offsets = [0, 0], sizes = [1, 256], strides = [1, 1]} : vector<3x256xf32> to vector<1x256xf32>
    %279 = vector.broadcast %278 : vector<1x256xf32> to vector<3x256xf32>
    %280 = arith.addf %277, %279 : vector<3x256xf32>
    %281 = vector.extract_strided_slice %273 {offsets = [3, 0], sizes = [3, 256], strides = [1, 1]} : vector<9x256xf32> to vector<3x256xf32>
    %282 = vector.extract_strided_slice %271 {offsets = [1, 0], sizes = [1, 256], strides = [1, 1]} : vector<3x256xf32> to vector<1x256xf32>
    %283 = vector.broadcast %282 : vector<1x256xf32> to vector<3x256xf32>
    %284 = arith.mulf %281, %283 : vector<3x256xf32>
    %285 = vector.extract_strided_slice %265 {offsets = [1, 0], sizes = [1, 256], strides = [1, 1]} : vector<3x256xf32> to vector<1x256xf32>
    %286 = vector.broadcast %285 : vector<1x256xf32> to vector<3x256xf32>
    %287 = arith.addf %284, %286 : vector<3x256xf32>
    %288 = vector.extract_strided_slice %273 {offsets = [6, 0], sizes = [3, 256], strides = [1, 1]} : vector<9x256xf32> to vector<3x256xf32>
    %289 = vector.extract_strided_slice %271 {offsets = [2, 0], sizes = [1, 256], strides = [1, 1]} : vector<3x256xf32> to vector<1x256xf32>
    %290 = vector.broadcast %289 : vector<1x256xf32> to vector<3x256xf32>
    %291 = arith.mulf %288, %290 : vector<3x256xf32>
    %292 = vector.extract_strided_slice %265 {offsets = [2, 0], sizes = [1, 256], strides = [1, 1]} : vector<3x256xf32> to vector<1x256xf32>
    %293 = vector.broadcast %292 : vector<1x256xf32> to vector<3x256xf32>
    %294 = arith.addf %291, %293 : vector<3x256xf32>
    %295 = tpu.concatenate %280, %287, %294 in 0 : vector<3x256xf32>, vector<3x256xf32>, vector<3x256xf32> -> vector<9x256xf32>
    %c1_194 = arith.constant 1 : index
    %c0_195 = arith.constant 0 : index
    %c0_196 = arith.constant 0 : index
    %296 = vector.load %arg9[%c1_194, %c0_195, %c0_196] : memref<2x9x256xf32, #tpu.memory_space<vmem>>, vector<1x9x256xf32>
    %297 = vector.shape_cast %296 : vector<1x9x256xf32> to vector<9x256xf32>
    %298 = vector.shape_cast %295 : vector<9x256xf32> to vector<1x9x256xf32>
    tpu.vector_store %arg9[%c1_194, %c0_195, %c0_196], %298 {strides = array<i32>} : memref<2x9x256xf32, #tpu.memory_space<vmem>>, vector<1x9x256xf32>,
    %299 = tpu.concatenate %295, %1 in 0 : vector<9x256xf32>, vector<7x256xf32> -> vector<16x256xf32>
    %c0_197 = arith.constant 0 : index
    %c0_198 = arith.constant 0 : index
    %300 = vector.load %arg6[%c0_197, %c0_198] : memref<8x256xf32, #tpu.memory_space<vmem>>, vector<8x256xf32>
    %c17_i32_199 = arith.constant 17 : i32
    %301 = tpu.dynamic_rotate %299 by %c17_i32_199 dim 1 : vector<16x256xf32>, i32 -> vector<16x256xf32>
    %c0_200 = arith.constant 0 : index
    %c0_201 = arith.constant 0 : index
    %c0_202 = arith.constant 0 : index
    %302 = vector.load %arg5[%c0_200, %c0_201, %c0_202] : memref<9x8x16xf32, #tpu.memory_space<vmem>>, vector<1x8x16xf32>
    %303 = vector.shape_cast %302 : vector<1x8x16xf32> to vector<8x16xf32>
    %cst_203 = arith.constant dense<0.000000e+00> : vector<8x256xf32>
    %304 = tpu.matmul %303, %301, %cst_203 {dimension_numbers = #tpu.dot_dimension_numbers<[1], [0], [0], [1], [0, 0, 1, 1], [], []>} : vector<8x16xf32>, vector<16x256xf32>, vector<8x256xf32> -> vector<8x256xf32>
    %c0_204 = arith.constant 0 : index
    %c0_205 = arith.constant 0 : index
    %305 = vector.load %arg7[%c0_204, %c0_205] : memref<9x256xf32, #tpu.memory_space<vmem>>, vector<1x256xf32>
    %306 = vector.broadcast %305 : vector<1x256xf32> to vector<8x256xf32>
    %307 = arith.mulf %304, %306 : vector<8x256xf32>
    %308 = arith.addf %300, %307 : vector<8x256xf32>
    %c16_i32_206 = arith.constant 16 : i32
    %309 = tpu.dynamic_rotate %299 by %c16_i32_206 dim 1 : vector<16x256xf32>, i32 -> vector<16x256xf32>
    %c1_207 = arith.constant 1 : index
    %c0_208 = arith.constant 0 : index
    %c0_209 = arith.constant 0 : index
    %310 = vector.load %arg5[%c1_207, %c0_208, %c0_209] : memref<9x8x16xf32, #tpu.memory_space<vmem>>, vector<1x8x16xf32>
    %311 = vector.shape_cast %310 : vector<1x8x16xf32> to vector<8x16xf32>
    %cst_210 = arith.constant dense<0.000000e+00> : vector<8x256xf32>
    %312 = tpu.matmul %311, %309, %cst_210 {dimension_numbers = #tpu.dot_dimension_numbers<[1], [0], [0], [1], [0, 0, 1, 1], [], []>} : vector<8x16xf32>, vector<16x256xf32>, vector<8x256xf32> -> vector<8x256xf32>
    %c1_211 = arith.constant 1 : index
    %c0_212 = arith.constant 0 : index
    %313 = vector.load %arg7[%c1_211, %c0_212] : memref<9x256xf32, #tpu.memory_space<vmem>>, vector<1x256xf32>
    %314 = vector.broadcast %313 : vector<1x256xf32> to vector<8x256xf32>
    %315 = arith.mulf %312, %314 : vector<8x256xf32>
    %316 = arith.addf %308, %315 : vector<8x256xf32>
    %c15_i32_213 = arith.constant 15 : i32
    %317 = tpu.dynamic_rotate %299 by %c15_i32_213 dim 1 : vector<16x256xf32>, i32 -> vector<16x256xf32>
    %c2_214 = arith.constant 2 : index
    %c0_215 = arith.constant 0 : index
    %c0_216 = arith.constant 0 : index
    %318 = vector.load %arg5[%c2_214, %c0_215, %c0_216] : memref<9x8x16xf32, #tpu.memory_space<vmem>>, vector<1x8x16xf32>
    %319 = vector.shape_cast %318 : vector<1x8x16xf32> to vector<8x16xf32>
    %cst_217 = arith.constant dense<0.000000e+00> : vector<8x256xf32>
    %320 = tpu.matmul %319, %317, %cst_217 {dimension_numbers = #tpu.dot_dimension_numbers<[1], [0], [0], [1], [0, 0, 1, 1], [], []>} : vector<8x16xf32>, vector<16x256xf32>, vector<8x256xf32> -> vector<8x256xf32>
    %c2_218 = arith.constant 2 : index
    %c0_219 = arith.constant 0 : index
    %321 = vector.load %arg7[%c2_218, %c0_219] : memref<9x256xf32, #tpu.memory_space<vmem>>, vector<1x256xf32>
    %322 = vector.broadcast %321 : vector<1x256xf32> to vector<8x256xf32>
    %323 = arith.mulf %320, %322 : vector<8x256xf32>
    %324 = arith.addf %316, %323 : vector<8x256xf32>
    %c1_i32_220 = arith.constant 1 : i32
    %325 = tpu.dynamic_rotate %299 by %c1_i32_220 dim 1 : vector<16x256xf32>, i32 -> vector<16x256xf32>
    %c3_221 = arith.constant 3 : index
    %c0_222 = arith.constant 0 : index
    %c0_223 = arith.constant 0 : index
    %326 = vector.load %arg5[%c3_221, %c0_222, %c0_223] : memref<9x8x16xf32, #tpu.memory_space<vmem>>, vector<1x8x16xf32>
    %327 = vector.shape_cast %326 : vector<1x8x16xf32> to vector<8x16xf32>
    %cst_224 = arith.constant dense<0.000000e+00> : vector<8x256xf32>
    %328 = tpu.matmul %327, %325, %cst_224 {dimension_numbers = #tpu.dot_dimension_numbers<[1], [0], [0], [1], [0, 0, 1, 1], [], []>} : vector<8x16xf32>, vector<16x256xf32>, vector<8x256xf32> -> vector<8x256xf32>
    %c3_225 = arith.constant 3 : index
    %c0_226 = arith.constant 0 : index
    %329 = vector.load %arg7[%c3_225, %c0_226] : memref<9x256xf32, #tpu.memory_space<vmem>>, vector<1x256xf32>
    %330 = vector.broadcast %329 : vector<1x256xf32> to vector<8x256xf32>
    %331 = arith.mulf %328, %330 : vector<8x256xf32>
    %332 = arith.addf %324, %331 : vector<8x256xf32>
    %c4_227 = arith.constant 4 : index
    %c0_228 = arith.constant 0 : index
    %c0_229 = arith.constant 0 : index
    %333 = vector.load %arg5[%c4_227, %c0_228, %c0_229] : memref<9x8x16xf32, #tpu.memory_space<vmem>>, vector<1x8x16xf32>
    %334 = vector.shape_cast %333 : vector<1x8x16xf32> to vector<8x16xf32>
    %cst_230 = arith.constant dense<0.000000e+00> : vector<8x256xf32>
    %335 = tpu.matmul %334, %299, %cst_230 {dimension_numbers = #tpu.dot_dimension_numbers<[1], [0], [0], [1], [0, 0, 1, 1], [], []>} : vector<8x16xf32>, vector<16x256xf32>, vector<8x256xf32> -> vector<8x256xf32>
    %336 = arith.addf %332, %335 : vector<8x256xf32>
    %c255_i32_231 = arith.constant 255 : i32
    %337 = tpu.dynamic_rotate %299 by %c255_i32_231 dim 1 : vector<16x256xf32>, i32 -> vector<16x256xf32>
    %c5_232 = arith.constant 5 : index
    %c0_233 = arith.constant 0 : index
    %c0_234 = arith.constant 0 : index
    %338 = vector.load %arg5[%c5_232, %c0_233, %c0_234] : memref<9x8x16xf32, #tpu.memory_space<vmem>>, vector<1x8x16xf32>
    %339 = vector.shape_cast %338 : vector<1x8x16xf32> to vector<8x16xf32>
    %cst_235 = arith.constant dense<0.000000e+00> : vector<8x256xf32>
    %340 = tpu.matmul %339, %337, %cst_235 {dimension_numbers = #tpu.dot_dimension_numbers<[1], [0], [0], [1], [0, 0, 1, 1], [], []>} : vector<8x16xf32>, vector<16x256xf32>, vector<8x256xf32> -> vector<8x256xf32>
    %c5_236 = arith.constant 5 : index
    %c0_237 = arith.constant 0 : index
    %341 = vector.load %arg7[%c5_236, %c0_237] : memref<9x256xf32, #tpu.memory_space<vmem>>, vector<1x256xf32>
    %342 = vector.broadcast %341 : vector<1x256xf32> to vector<8x256xf32>
    %343 = arith.mulf %340, %342 : vector<8x256xf32>
    %344 = arith.addf %336, %343 : vector<8x256xf32>
    %c241_i32_238 = arith.constant 241 : i32
    %345 = tpu.dynamic_rotate %299 by %c241_i32_238 dim 1 : vector<16x256xf32>, i32 -> vector<16x256xf32>
    %c6_239 = arith.constant 6 : index
    %c0_240 = arith.constant 0 : index
    %c0_241 = arith.constant 0 : index
    %346 = vector.load %arg5[%c6_239, %c0_240, %c0_241] : memref<9x8x16xf32, #tpu.memory_space<vmem>>, vector<1x8x16xf32>
    %347 = vector.shape_cast %346 : vector<1x8x16xf32> to vector<8x16xf32>
    %cst_242 = arith.constant dense<0.000000e+00> : vector<8x256xf32>
    %348 = tpu.matmul %347, %345, %cst_242 {dimension_numbers = #tpu.dot_dimension_numbers<[1], [0], [0], [1], [0, 0, 1, 1], [], []>} : vector<8x16xf32>, vector<16x256xf32>, vector<8x256xf32> -> vector<8x256xf32>
    %c6_243 = arith.constant 6 : index
    %c0_244 = arith.constant 0 : index
    %349 = vector.load %arg7[%c6_243, %c0_244] : memref<9x256xf32, #tpu.memory_space<vmem>>, vector<1x256xf32>
    %350 = vector.broadcast %349 : vector<1x256xf32> to vector<8x256xf32>
    %351 = arith.mulf %348, %350 : vector<8x256xf32>
    %352 = arith.addf %344, %351 : vector<8x256xf32>
    %c240_i32_245 = arith.constant 240 : i32
    %353 = tpu.dynamic_rotate %299 by %c240_i32_245 dim 1 : vector<16x256xf32>, i32 -> vector<16x256xf32>
    %c7_246 = arith.constant 7 : index
    %c0_247 = arith.constant 0 : index
    %c0_248 = arith.constant 0 : index
    %354 = vector.load %arg5[%c7_246, %c0_247, %c0_248] : memref<9x8x16xf32, #tpu.memory_space<vmem>>, vector<1x8x16xf32>
    %355 = vector.shape_cast %354 : vector<1x8x16xf32> to vector<8x16xf32>
    %cst_249 = arith.constant dense<0.000000e+00> : vector<8x256xf32>
    %356 = tpu.matmul %355, %353, %cst_249 {dimension_numbers = #tpu.dot_dimension_numbers<[1], [0], [0], [1], [0, 0, 1, 1], [], []>} : vector<8x16xf32>, vector<16x256xf32>, vector<8x256xf32> -> vector<8x256xf32>
    %c7_250 = arith.constant 7 : index
    %c0_251 = arith.constant 0 : index
    %357 = vector.load %arg7[%c7_250, %c0_251] : memref<9x256xf32, #tpu.memory_space<vmem>>, vector<1x256xf32>
    %358 = vector.broadcast %357 : vector<1x256xf32> to vector<8x256xf32>
    %359 = arith.mulf %356, %358 : vector<8x256xf32>
    %360 = arith.addf %352, %359 : vector<8x256xf32>
    %c239_i32_252 = arith.constant 239 : i32
    %361 = tpu.dynamic_rotate %299 by %c239_i32_252 dim 1 : vector<16x256xf32>, i32 -> vector<16x256xf32>
    %c8_253 = arith.constant 8 : index
    %c0_254 = arith.constant 0 : index
    %c0_255 = arith.constant 0 : index
    %362 = vector.load %arg5[%c8_253, %c0_254, %c0_255] : memref<9x8x16xf32, #tpu.memory_space<vmem>>, vector<1x8x16xf32>
    %363 = vector.shape_cast %362 : vector<1x8x16xf32> to vector<8x16xf32>
    %cst_256 = arith.constant dense<0.000000e+00> : vector<8x256xf32>
    %364 = tpu.matmul %363, %361, %cst_256 {dimension_numbers = #tpu.dot_dimension_numbers<[1], [0], [0], [1], [0, 0, 1, 1], [], []>} : vector<8x16xf32>, vector<16x256xf32>, vector<8x256xf32> -> vector<8x256xf32>
    %c8_257 = arith.constant 8 : index
    %c0_258 = arith.constant 0 : index
    %365 = vector.load %arg7[%c8_257, %c0_258] : memref<9x256xf32, #tpu.memory_space<vmem>>, vector<1x256xf32>
    %366 = vector.broadcast %365 : vector<1x256xf32> to vector<8x256xf32>
    %367 = arith.mulf %364, %366 : vector<8x256xf32>
    %368 = arith.addf %360, %367 : vector<8x256xf32>
    %369 = vector.extract_strided_slice %368 {offsets = [0, 0], sizes = [3, 256], strides = [1, 1]} : vector<8x256xf32> to vector<3x256xf32>
    %370 = vector.extract_strided_slice %368 {offsets = [3, 0], sizes = [3, 256], strides = [1, 1]} : vector<8x256xf32> to vector<3x256xf32>
    %cst_259 = arith.constant 5.000000e-01 : f32
    %371 = vector.broadcast %cst_259 : f32 to vector<3x256xf32>
    %372 = arith.mulf %371, %369 : vector<3x256xf32>
    %373 = math.tanh %372 : vector<3x256xf32>
    %cst_260 = arith.constant 8.000000e-01 : f32
    %374 = vector.broadcast %cst_260 : f32 to vector<3x256xf32>
    %375 = arith.mulf %374, %373 : vector<3x256xf32>
    %376 = math.exp %375 : vector<3x256xf32>
    %377 = arith.mulf %193, %376 : vector<3x256xf32>
    %378 = arith.addf %377, %370 : vector<3x256xf32>
    %c1_261 = arith.constant 1 : index
    %c0_262 = arith.constant 0 : index
    %c0_263 = arith.constant 0 : index
    %379 = vector.load %arg8[%c1_261, %c0_262, %c0_263] : memref<2x3x256xf32, #tpu.memory_space<vmem>>, vector<1x3x256xf32>
    %380 = vector.shape_cast %379 : vector<1x3x256xf32> to vector<3x256xf32>
    %381 = vector.shape_cast %378 : vector<3x256xf32> to vector<1x3x256xf32>
    tpu.vector_store %arg8[%c1_261, %c0_262, %c0_263], %381 {strides = array<i32>} : memref<2x3x256xf32, #tpu.memory_space<vmem>>, vector<1x3x256xf32>,
    return
  }
  func.func @transform_0(%arg0: i32) -> (i32, i32, i32) {
    %c0_i32 = arith.constant 0 : i32
    %c0_i32_0 = arith.constant 0 : i32
    %c0_i32_1 = arith.constant 0 : i32
    return %arg0, %c0_i32, %c0_i32_0 : i32, i32, i32
  }
  func.func @transform_1(%arg0: i32) -> (i32, i32, i32) {
    %c0_i32 = arith.constant 0 : i32
    %c0_i32_0 = arith.constant 0 : i32
    %c0_i32_1 = arith.constant 0 : i32
    return %arg0, %c0_i32, %c0_i32_0 : i32, i32, i32
  }
  func.func @transform_2(%arg0: i32) -> (i32, i32, i32) {
    %c0_i32 = arith.constant 0 : i32
    %c0_i32_0 = arith.constant 0 : i32
    %c0_i32_1 = arith.constant 0 : i32
    %c0_i32_2 = arith.constant 0 : i32
    return %c0_i32, %c0_i32_0, %c0_i32_1 : i32, i32, i32
  }
  func.func @transform_3(%arg0: i32) -> (i32, i32) {
    %c0_i32 = arith.constant 0 : i32
    %c0_i32_0 = arith.constant 0 : i32
    %c0_i32_1 = arith.constant 0 : i32
    return %c0_i32, %c0_i32_0 : i32, i32
  }
  func.func @transform_4(%arg0: i32) -> (i32, i32, i32) {
    %c0_i32 = arith.constant 0 : i32
    %c0_i32_0 = arith.constant 0 : i32
    %c0_i32_1 = arith.constant 0 : i32
    %c0_i32_2 = arith.constant 0 : i32
    return %c0_i32, %c0_i32_0, %c0_i32_1 : i32, i32, i32
  }
  func.func @transform_5(%arg0: i32) -> (i32, i32) {
    %c0_i32 = arith.constant 0 : i32
    %c0_i32_0 = arith.constant 0 : i32
    %c0_i32_1 = arith.constant 0 : i32
    return %c0_i32, %c0_i32_0 : i32, i32
  }
  func.func @transform_6(%arg0: i32) -> (i32, i32) {
    %c0_i32 = arith.constant 0 : i32
    %c0_i32_0 = arith.constant 0 : i32
    %c0_i32_1 = arith.constant 0 : i32
    return %c0_i32, %c0_i32_0 : i32, i32
  }
  func.func @transform_7(%arg0: i32) -> (i32, i32, i32) {
    %c0_i32 = arith.constant 0 : i32
    %c0_i32_0 = arith.constant 0 : i32
    %c0_i32_1 = arith.constant 0 : i32
    return %arg0, %c0_i32, %c0_i32_0 : i32, i32, i32
  }
  func.func @transform_8(%arg0: i32) -> (i32, i32, i32) {
    %c0_i32 = arith.constant 0 : i32
    %c0_i32_0 = arith.constant 0 : i32
    %c0_i32_1 = arith.constant 0 : i32
    return %arg0, %c0_i32, %c0_i32_0 : i32, i32, i32
  }
}

</mosaic_0001>

<bundles_post_ra>
// kernel: spatial_flow_step_forward.1
= control target key start
LH: loop header
LB: loop body
LE: loop exit
PB: predicated region body
PF: predicated region fallthrough
CT: control target
= control target key end

     0   :  { %s4753_s27 = smov 0   ;;  %s5672_s0 = inlined_call_operand.vmem [shape: f32[4,3,256], index: 0, kind: input, shape index: {}]   ;;  %s5673_s1 = inlined_call_operand.vmem [shape: f32[4,9,256], index: 1, kind: input, shape index: {}]   ;;  %s5674_s2 = inlined_call_operand.vmem [shape: f32[9,8,8], index: 2, kind: input, shape index: {}]   ;;  %s5675_s3 = inlined_call_operand.vmem [shape: f32[8,256], index: 3, kind: input, shape index: {}]   ;;  %s5676_s4 = inlined_call_operand.vmem [shape: f32[9,8,16], index: 4, kind: input, shape index: {}]   ;;  %s5677_s5 = inlined_call_operand.vmem [shape: f32[8,256], index: 5, kind: input, shape index: {}]   ;;  %s5678_s6 = inlined_call_operand.vmem [shape: f32[9,256], index: 6, kind: input, shape index: {}]   ;;  %s5679_s7 = inlined_call_operand.vmem [shape: f32[4,3,256], index: 7, kind: output, shape index: {0}]   ;;  %s5680_s8 = inlined_call_operand.vmem [shape: f32[4,9,256], index: 8, kind: output, shape index: {1}]  }
   0x1 LB: > { %s4261_s28 = sadd.s32 4294967295, %s4696_s27   ;;  %p4265_p0 = scmp.ge.s32.totalorder %s4696_s27, 1  ;;  %s4696_s27 = sphi %s4753_s27, %s19_s27  }
   0x2   : > { %p279_p1 = scmp.lt.s32.totalorder %s4696_s27, 3 }
   0x4   : > { %p280_p2 = pnand %p4265_p0, %p279_p1 }
   0x5   : > { %s4266_s29 = sshll.u32 (!%p280_p2), %s4261_s28, 1  ;;  %vm359_vm0 = vcmask (!%p280_p2), 1042432   ;;  %v4698_v1 = vmov (!%p280_p2), 0.0   ;;  %s4699_s12 = smov (!%p280_p2), 16   ;;  %v368_v5 = vlaneseq (!%p280_p2)  ;;  %v4811_v13 = vld [vmem:[%s5674_s2 + $0x8] sm:$0xff] (!%p280_p2)  ;;  %vm374_vm3 = vcmask (!%p280_p2), 64512  }
   0x6   : > { %283 = sbr.rel (%p280_p2) target bundleno = 1248 (0x4e0), region = 48  ;;  %p328_p3 = scmp.lt.s32.totalorder (!%p280_p2), %s4266_s29, 3  ;;  %442 = vmatprep.mubr.f32.mxu0 (!%p280_p2), %v4698_v1  ;;  %541 = vmatprep.mubr.f32.mxu1 (!%p280_p2), %v4698_v1  ;;  %v4824_v18 = vld [vmem:[%s5674_s2] sm:$0xff] (!%p280_p2)  ;;  %v4842_v25 = vld [vmem:[%s5674_s2 + $0x10] sm:$0xff] (!%p280_p2)  ;;  %v4847_v26 = vld [vmem:[%s5674_s2 + $0x18] sm:$0xff] (!%p280_p2)  ;;  %vm1323_vm10 = vcmask (!%p280_p2), 1045504  }
   0x7   : > { %s4700_s13 = smov (!%p280_p2), 17   ;;  %s4701_s14 = smov (!%p280_p2), 15   ;;  %v4801_v6 = vand.u32 (!%p280_p2), 127, %v368_v5  ;;  %v4866_v31 = vld [vmem:[%s5674_s2 + $0x20] sm:$0xff] (!%p280_p2)  ;;  %v4871_v32 = vld [vmem:[%s5674_s2 + $0x28] sm:$0xff] (!%p280_p2)  ;;  %v4887_v37 = vld [vmem:[%s5674_s2 + $0x30] sm:$0xff] (!%p280_p2) }
   0x8   : > { %s4702_s15 = smov (!%p280_p2), 1   ;;  %s4703_s16 = smov (!%p280_p2), 127   ;;  %v4900_v42 = vld [vmem:[%s5674_s2 + $0x38] sm:$0xff] (!%p280_p2)  ;;  %v4913_v47 = vld [vmem:[%s5674_s2 + $0x40] sm:$0xff] (!%p280_p2)  ;;  %v4943_v52 = vshrl.u32 (!%p280_p2), %v368_v5, 7  ;;  %v4973_v5 = vld [vmem:[%s5675_s3 + $0x8] sm:$0xff] (!%p280_p2) }
   0x9   : > { %s4704_s17 = smov (!%p280_p2), 113   ;;  %s4705_s18 = smov (!%p280_p2), 112   ;;  %vm469_vm1 = vcmp.lt.s32.totalorder (!%p280_p2), %v4801_v6, 16  ;;  %vm370_vm2 = vcmp.lt.s32.totalorder (!%p280_p2), %v4801_v6, 17  ;;  %vm569_vm4 = vcmp.lt.s32.totalorder (!%p280_p2), %v4801_v6, 15  ;;  %vm669_vm5 = vcmp.lt.s32.totalorder (!%p280_p2), %v4801_v6, 1 }
   0xa   : > { %s4706_s19 = smov (!%p280_p2), 111   ;;  %vm847_vm6 = vcmp.lt.s32.totalorder (!%p280_p2), %v4801_v6, 127  ;;  %vm947_vm7 = vcmp.lt.s32.totalorder (!%p280_p2), %v4801_v6, 113  ;;  %vm1047_vm8 = vcmp.lt.s32.totalorder (!%p280_p2), %v4801_v6, 112  ;;  %vm1147_vm9 = vcmp.lt.s32.totalorder (!%p280_p2), %v4801_v6, 111 }
   0xb   : > { %v4946_v53 = vsub.s32 (!%p280_p2), 0, %v4943_v52  ;;  %v4949_v54 = vsub.s32 (!%p280_p2), 1, %v4943_v52  ;;  %v449_v55 = vld [vmem:[%s5678_s6] ss:$8 sm:$0x3] (!%p280_p2)  ;;  %vm1330_vm11 = vcmask (!%p280_p2), 1040384  }
   0xc   : > { %v4281_v56 = vld [vmem:[%s5678_s6 + $0x1] ss:$8 sm:$0x3] (!%p280_p2)  ;;  %v4284_v63 = vld [vmem:[%s5678_s6 + $0x2] ss:$8 sm:$0x3] (!%p280_p2) }
   0xd   : > { %s5686_s29 = smov (!%p328_p3, %s4266_s29), 3  ;;  %v454_v58 = vrot.slane %v449_v55, %v4946_v53  ;;  %v554_v59 = vrot.slane %v4281_v56, %v4946_v53  ;;  %v458_v61 = vrot.slane %v449_v55, %v4949_v54  ;;  %v558_v62 = vrot.slane %v4281_v56, %v4949_v54 }
   0xe   : > { %s4396_s30 = sshll.u32 %s5686_s29, 3  ;;  %s4397_s9 = sshll.u32 %s5686_s29, 5  ;;  %vm1348_vm12 = vcmask 130048   ;;  %vm4707_vm13 = vmmov 1   ;;  %vm2264_vm15 = vcmask 1044484  }
   0xf   : > { %s4769_s11 = scalar_lea.vmem %s5672_s0, %s4396_s30  ;;  %s5015_s21 = scalar_lea.vmem %s5673_s1, %s4397_s9  ;;  %vm5159_vm14 = vmpackc.low %vm1330_vm11, %vm4707_vm13 }
  0x10   : > { %v4772_v0 = vld [vmem:[%s4769_s11] sm:$0x77]  ;;  %v4920_v48 = vld [vmem:[%s4769_s11 + $0x8] sm:$0x77]  ;;  %s5041_s24 = scalar_lea.vmem %s5680_s8, %s4397_s9  ;;  %s5459_s28 = scalar_lea.vmem %s5679_s7, %s4396_s30 }
  0x11   : > { %v360_v2 = vsel %vm359_vm0, %v4772_v0, 0.0  ;;  %v4780_v3 = vcombine.high %v4772_v0, %v4772_v0  ;;  %v4924_v49 = vcombine.high %v4920_v48, %v4920_v48  ;;  %v4928_v50 = vsel %vm359_vm0, %v4920_v48, 0.0 }
  0x12   : > { %465 = vrot.lane.b32.xlu1 %v360_v2, %s4699_s12  ;;  %364 = vrot.lane.b32.xlu0 %v360_v2, %s4700_s13 }
  0x13   : > { %v361_v4 = vsel %vm359_vm0, %v4780_v3, 0.0  ;;  %v4934_v51 = vsel %vm359_vm0, %v4924_v49, 0.0 }
  0x16   : > { %565 = vrot.lane.b32.xlu0 %v360_v2, %s4701_s14  ;;  %467 = vrot.lane.b32.xlu1 %v361_v4, %s4699_s12 }
  0x1a   : > { %567 = vrot.lane.b32.xlu1 %v361_v4, %s4701_s14  ;;  %366 = vrot.lane.b32.xlu0 %v361_v4, %s4700_s13 }
  0x1e   : > { %667 = vrot.lane.b32.xlu1 %v361_v4, %s4702_s15  ;;  %665 = vrot.lane.b32.xlu0 %v360_v2, %s4702_s15 }
  0x22   : > { %845 = vrot.lane.b32.xlu1 %v361_v4, %s4703_s16  ;;  %843 = vrot.lane.b32.xlu0 %v360_v2, %s4703_s16 }
  0x26   : > { %945 = vrot.lane.b32.xlu1 %v361_v4, %s4704_s17  ;;  %943 = vrot.lane.b32.xlu0 %v360_v2, %s4704_s17 }
  0x2a   : > { %1045 = vrot.lane.b32.xlu1 %v361_v4, %s4705_s18  ;;  %1043 = vrot.lane.b32.xlu0 %v360_v2, %s4705_s18 }
  0x2e   : > { %1145 = vrot.lane.b32.xlu1 %v361_v4, %s4706_s19  ;;  %1143 = vrot.lane.b32.xlu0 %v360_v2, %s4706_s19  ;;  %v362_v2 = vld [vmem:[%s5675_s3] sm:$0xff] }
  0x32   : > { %2282 = vrot.lane.b32.xlu0 %v4928_v50, %s4700_s13  ;;  %2284 = vrot.lane.b32.xlu1 %v4934_v51, %s4700_s13 }
  0x36   : > { %2379 = vrot.lane.b32.xlu0 %v4928_v50, %s4699_s12  ;;  %2381 = vrot.lane.b32.xlu1 %v4934_v51, %s4699_s12 }
  0x84   : > { %v466_v7 = vpop.permute.xlu1 %465  ;;  %v365_v8 = vpop.permute.xlu0 %364 }
  0x88   : > { %v566_v9 = vpop.permute.xlu0 %565  ;;  %v468_v10 = vpop.permute.xlu1 %467 }
  0x89   : > { %v470_v11 = vsel %vm469_vm1, %v466_v7, %v468_v10  ;;  %v471_v12 = vsel %vm469_vm1, %v468_v10, %v466_v7 }
  0x8a   : > { %477 = vmatprep.subr.mxu1 %v470_v11 }
  0x8b   : > { %478 = vmatpush1.msra.mxu1 %v471_v12 }
  0x8c   : > { %v568_v14 = vpop.permute.xlu1 %567  ;;  %v367_v15 = vpop.permute.xlu0 %366  ;;  %4280 = vmatmul.mubr.msk.f32.vlgmr.msra.gmra.mrb[0].mxu1 %vm374_vm3, %v4811_v13 }
  0x8d   : > { %v371_v16 = vsel %vm370_vm2, %v365_v8, %v367_v15  ;;  %v372_v17 = vsel %vm370_vm2, %v367_v15, %v365_v8  ;;  %741 = vmatprep.mubr.f32.mxu1 %v4698_v1  ;;  %v570_v19 = vsel %vm569_vm4, %v566_v9, %v568_v14  ;;  %v571_v20 = vsel %vm569_vm4, %v568_v14, %v566_v9 }
  0x8e   : > { %378 = vmatprep.subr.mxu0 %v371_v16  ;;  %v654_v9 = vrot.slane %v4284_v63, %v4946_v53  ;;  %v658_v14 = vrot.slane %v4284_v63, %v4949_v54  ;;  %v4294_v16 = vld [vmem:[%s5678_s6 + $0x5] ss:$8 sm:$0x3] }
  0x8f   : > { %379 = vmatpush1.msra.mxu0 %v372_v17 }
  0x90   : > { %v668_v21 = vpop.permute.xlu1 %667  ;;  %577 = vmatprep.subr.mxu0 %v570_v19  ;;  %v666_v22 = vpop.permute.xlu0 %665  ;;  %4278 = vmatmul.mubr.msk.f32.vlgmr.msra.gmra.mrb[0].mxu0 %vm374_vm3, %v4824_v18 }
  0x91   : > { %v671_v23 = vsel %vm669_vm5, %v668_v21, %v666_v22  ;;  %578 = vmatpush1.msra.mxu0 %v571_v20  ;;  %v670_v24 = vsel %vm669_vm5, %v666_v22, %v668_v21  ;;  %641 = vmatprep.mubr.f32.mxu0 %v4698_v1 }
  0x92   : > { %677 = vmatprep.subr.mxu1 %v670_v24  ;;  %4289 = vmatprep.subr.msk.mxu0 %vm359_vm0, %v4780_v3 }
  0x93   : > { %678 = vmatpush1.msra.mxu1 %v671_v23 }
  0x94   : > { %v846_v27 = vpop.permute.xlu1 %845  ;;  %v844_v28 = vpop.permute.xlu0 %843  ;;  %4283 = vmatmul.mubr.msk.f32.vlgmr.msra.gmra.mrb[2].mxu0 %vm374_vm3, %v4842_v25  ;;  %4286 = vmatmul.mubr.msk.f32.vlgmr.msra.gmra.mrb[2].mxu1 %vm374_vm3, %v4847_v26 }
  0x95   : > { %v848_v29 = vsel %vm847_vm6, %v844_v28, %v846_v27  ;;  %v849_v30 = vsel %vm847_vm6, %v846_v27, %v844_v28  ;;  %4290 = vmatpush1.msk.msra.mxu0 %vm359_vm0, %v4772_v0  ;;  %834 = vmatprep.mubr.f32.mxu0 %v4698_v1  ;;  %v4287_v0 = vld [vmem:[%s5678_s6 + $0x3] ss:$8 sm:$0x3] }
  0x96   : > { %855 = vmatprep.subr.mxu1 %v849_v30  ;;  %919 = vmatprep.mubr.f32.mxu1 %v4698_v1  ;;  %v754_v10 = vrot.slane %v4287_v0, %v4946_v53  ;;  %v758_v15 = vrot.slane %v4287_v0, %v4949_v54 }
  0x97   : > { %856 = vmatpush1.msra.mxu1 %v848_v29  ;;  %v932_v29 = vrot.slane %v4294_v16, %v4946_v53 }
  0x98   : > { %v946_v33 = vpop.permute.xlu1 %945  ;;  %v944_v34 = vpop.permute.xlu0 %943  ;;  %4291 = vmatmul.mubr.msk.f32.vlgmr.msra.gmra.mrb[4].mxu0 %vm374_vm3, %v4866_v31  ;;  %4293 = vmatmul.mubr.msk.f32.vlgmr.msra.gmra.mrb[4].mxu1 %vm374_vm3, %v4871_v32 }
  0x99   : > { %v948_v35 = vsel %vm947_vm7, %v944_v34, %v946_v33  ;;  %v949_v36 = vsel %vm947_vm7, %v946_v33, %v944_v34  ;;  %1019 = vmatprep.mubr.f32.mxu0 %v4698_v1  ;;  %1119 = vmatprep.mubr.f32.mxu1 %v4698_v1 }
  0x9a   : > { %955 = vmatprep.subr.mxu0 %v949_v36  ;;  %v4297_v36 = vld [vmem:[%s5678_s6 + $0x6] ss:$8 sm:$0x3] }
  0x9b   : > { %956 = vmatpush1.msra.mxu0 %v948_v35  ;;  %v936_v35 = vrot.slane %v4294_v16, %v4949_v54  ;;  %v1032_v55 = vrot.slane %v4297_v36, %v4946_v53 }
  0x9c   : > { %v1046_v38 = vpop.permute.xlu1 %1045  ;;  %v1044_v39 = vpop.permute.xlu0 %1043  ;;  %4296 = vmatmul.mubr.msk.f32.vlgmr.msra.gmra.mrb[6].mxu0 %vm374_vm3, %v4887_v37 }
  0x9d   : > { %v1048_v40 = vsel %vm1047_vm8, %v1044_v39, %v1046_v38  ;;  %v1049_v41 = vsel %vm1047_vm8, %v1046_v38, %v1044_v39  ;;  %1219 = vmatprep.mubr.f32.mxu0 %v4698_v1 }
  0x9e   : > { %1055 = vmatprep.subr.mxu1 %v1049_v41 }
  0x9f   : > { %1056 = vmatpush1.msra.mxu1 %v1048_v40 }
  0xa0   : > { %v1146_v43 = vpop.permute.xlu1 %1145  ;;  %4299 = vmatmul.mubr.msk.f32.vlgmr.msra.gmra.mrb[6].mxu1 %vm374_vm3, %v4900_v42  ;;  %v1144_v44 = vpop.permute.xlu0 %1143 }
  0xa1   : > { %v1148_v45 = vsel %vm1147_vm9, %v1144_v44, %v1146_v43  ;;  %v1149_v46 = vsel %vm1147_vm9, %v1146_v43, %v1144_v44  ;;  %1416 = vmatprep.mubr.f32.mxu1 %v4698_v1 }
  0xa2   : > { %1155 = vmatprep.subr.mxu0 %v1149_v46 }
  0xa3   : > { %1156 = vmatpush1.msra.mxu0 %v1148_v45 }
  0xa4   : > { %4302 = vmatmul.mubr.msk.f32.vlgmr.msra.gmra.mrb[8].mxu0 %vm374_vm3, %v4913_v47 }
  0xa5   : > { %1520 = vmatprep.mubr.f32.mxu0 %v4698_v1 }
 0x15f   : > { %v543_v57 = vpop.f32.mrb[0].mxu1 }
 0x160   : > { %v545_v60 = vpop.f32.mrb[1].mxu1  ;;  %v561_v8 = vmul.f32 %v554_v59, %v543_v57  ;;  %v4300_v59 = vld [vmem:[%s5678_s6 + $0x7] ss:$8 sm:$0x3] }
 0x161   : > { %v562_v12 = vmul.f32 %v558_v62, %v545_v60 }
 0x163   : > { %v444_v3 = vpop.f32.mrb[0].mxu0 }
 0x164   : > { %v461_v4 = vmul.f32 %v454_v58, %v444_v3  ;;  %v446_v7 = vpop.f32.mrb[1].mxu0  ;;  %v1036_v58 = vrot.slane %v4297_v36, %v4949_v54  ;;  %v1132_v3 = vrot.slane %v4300_v59, %v4946_v53 }
 0x165   : > { %v462_v11 = vmul.f32 %v458_v61, %v446_v7 }
 0x166   : > { %v463_v17 = vadd.f32 %v461_v4, %v362_v2 }
 0x167   : > { %v464_v19 = vadd.f32 %v462_v11, %v4973_v5  ;;  %v643_v20 = vpop.f32.mrb[2].mxu0  ;;  %v743_v21 = vpop.f32.mrb[2].mxu1 }
 0x168   : > { %v563_v22 = vadd.f32 %v561_v8, %v463_v17  ;;  %v661_v23 = vmul.f32 %v654_v9, %v643_v20  ;;  %v645_v24 = vpop.f32.mrb[3].mxu0  ;;  %v761_v27 = vmul.f32 %v754_v10, %v743_v21  ;;  %v745_v28 = vpop.f32.mrb[3].mxu1  ;;  %v1136_v8 = vrot.slane %v4300_v59, %v4949_v54  ;;  %v4303_v9 = vld [vmem:[%s5678_s6 + $0x10] ss:$8 sm:$0x3] }
 0x169   : > { %v564_v30 = vadd.f32 %v562_v12, %v464_v19  ;;  %v662_v33 = vmul.f32 %v658_v14, %v645_v24  ;;  %v762_v34 = vmul.f32 %v758_v15, %v745_v28  ;;  %v1232_v16 = vrot.slane %v4303_v9, %v4946_v53 }
 0x16a   : > { %v663_v38 = vadd.f32 %v661_v23, %v563_v22  ;;  %v1236_v19 = vrot.slane %v4303_v9, %v4949_v54 }
 0x16b   : > { %v664_v39 = vadd.f32 %v662_v33, %v564_v30  ;;  %v836_v40 = vpop.f32.mrb[4].mxu0  ;;  %v921_v41 = vpop.f32.mrb[4].mxu1 }
 0x16c   : > { %v763_v43 = vadd.f32 %v761_v27, %v663_v38  ;;  %v939_v44 = vmul.f32 %v932_v29, %v921_v41  ;;  %v838_v45 = vpop.f32.mrb[5].mxu0  ;;  %v923_v46 = vpop.f32.mrb[5].mxu1  ;;  %v5002_v41 = vsub.s32 3, %v4943_v52 }
 0x16d   : > { %v764_v56 = vadd.f32 %v762_v34, %v664_v39  ;;  %v940_v57 = vmul.f32 %v936_v35, %v923_v46 }
 0x16e   : > { %v841_v60 = vadd.f32 %v836_v40, %v763_v43  ;;  %v5005_v43 = vsub.s32 4, %v4943_v52 }
 0x16f   : > { %v842_v61 = vadd.f32 %v838_v45, %v764_v56  ;;  %v1021_v62 = vpop.f32.mrb[6].mxu0  ;;  %v5018_v45 = vsub.s32 2, %v4943_v52  ;;  %v1255_v56 = vld [vmem:[%s5015_s21 + $0x10] sm:$0x1] }
 0x170   : > { %v941_v63 = vadd.f32 %v939_v44, %v841_v60  ;;  %v1039_v0 = vmul.f32 %v1032_v55, %v1021_v62  ;;  %v1023_v2 = vpop.f32.mrb[7].mxu0  ;;  %v5008_v44 = vsub.s32 5, %v4943_v52  ;;  %v1253_v55 = vld [vmem:[%s5015_s21] sm:$0xff] }
 0x171   : > { %v942_v4 = vadd.f32 %v940_v57, %v842_v61  ;;  %v1040_v7 = vmul.f32 %v1036_v58, %v1023_v2  ;;  %v1256_v2 = vld [vmem:[%s5015_s21 + $0x18] sm:$0x1] }
 0x172   : > { %v1041_v10 = vadd.f32 %v1039_v0, %v941_v63  ;;  %v1254_v0 = vld [vmem:[%s5015_s21 + $0x8] sm:$0xff] }
 0x173   : > { %v1042_v11 = vadd.f32 %v1040_v7, %v942_v4  ;;  %v1121_v12 = vpop.f32.mrb[6].mxu1 }
 0x174   : > { %v1139_v14 = vmul.f32 %v1132_v3, %v1121_v12  ;;  %v1123_v15 = vpop.f32.mrb[7].mxu1 }
 0x175   : > { %v1140_v17 = vmul.f32 %v1136_v8, %v1123_v15 }
 0x176   : > { %v1141_v20 = vadd.f32 %v1139_v14, %v1041_v10 }
 0x177   : > { %v1142_v21 = vadd.f32 %v1140_v17, %v1042_v11  ;;  %v1221_v22 = vpop.f32.mrb[8].mxu0 }
 0x178   : > { %v1239_v23 = vmul.f32 %v1232_v16, %v1221_v22  ;;  %v1223_v24 = vpop.f32.mrb[9].mxu0 }
 0x179   : > { %v1240_v27 = vmul.f32 %v1236_v19, %v1223_v24 }
 0x17a   : > { %v1241_v28 = vadd.f32 %v1239_v23, %v1141_v20 }
 0x17b   : > { %v1242_v29 = vadd.f32 %v1240_v27, %v1142_v21 }
 0x17c   : > { %v1243_v30 = vmul.f32 0.5, %v1241_v28  ;;  %v1270_v57 = vrot.slane %v1241_v28, %v5002_v41  ;;  %v1290_v58 = vrot.slane %v1241_v28, %v5005_v43  ;;  %v1312_v59 = vrot.slane %v1241_v28, %v5008_v44 }
 0x17d   : > { %v1244_v33 = vmul.f32 0.5, %v1242_v29  ;;  %v1274_v60 = vrot.slane %v1242_v29, %v5002_v41  ;;  %v1294_v3 = vrot.slane %v1242_v29, %v5005_v43  ;;  %v1316_v9 = vrot.slane %v1242_v29, %v5008_v44 }
 0x17e   : > { %4656 = vtanh.f32 %v1243_v30 }
 0x17f   : > { %4658 = vtanh.f32 %v1244_v33 }
 0x188   : > { %v4657_v34 = vpop.eup %4656 }
 0x189   : > { %v4659_v35 = vpop.eup %4658  ;;  %v1247_v36 = vmul.f32 0.8, %v4657_v34 }
 0x18a   : > { %v1248_v38 = vmul.f32 0.8, %v4659_v35 }
 0x18b   : > { %v1249_v39 = vmul.f32 1.442695, %v1247_v36 }
 0x18c   : > { %v1251_v40 = vmul.f32 1.442695, %v1248_v38 }
 0x18d   : > { %4660 = vpow2.f32 %v1249_v39 }
 0x18e   : > { %4662 = vpow2.f32 %v1251_v40 }
 0x197   : > { %v4661_v46 = vpop.eup %4660 }
 0x198   : > { %v4663_v61 = vpop.eup %4662  ;;  %v1260_v62 = vrot.slane %v4661_v46, %v4946_v53  ;;  %v1280_v52 = vrot.slane %v4661_v46, %v4949_v54  ;;  %v1300_v63 = vrot.slane %v4661_v46, %v5018_v45 }
 0x199   : > { %v1264_v4 = vrot.slane %v4663_v61, %v4946_v53  ;;  %v1284_v7 = vrot.slane %v4663_v61, %v4949_v54  ;;  %v1304_v8 = vrot.slane %v4663_v61, %v5018_v45 }
 0x19a   : > { %v1265_v10 = vmul.f32 %v1260_v62, %v1253_v55  ;;  %v1285_v11 = vmul.f32 %v1280_v52, %v1253_v55  ;;  %v1305_v12 = vmul.f32 %v1300_v63, %v1253_v55  ;;  %v1307_v14 = vmul.f32 %v1300_v63, %v1255_v56  ;;  %v5113_v56 = vpop.permute.xlu0 %2282 }
 0x19b   : > { %v1266_v15 = vmul.f32 %v1264_v4, %v1254_v0  ;;  %v1286_v16 = vmul.f32 %v1284_v7, %v1254_v0  ;;  %v1306_v17 = vmul.f32 %v1304_v8, %v1254_v0  ;;  %v1308_v19 = vmul.f32 %v1304_v8, %v1256_v2 }
 0x19c   : > { %v1275_v20 = vadd.f32 %v1270_v57, %v1265_v10  ;;  %v1295_v21 = vadd.f32 %v1290_v58, %v1285_v11  ;;  %v1317_v22 = vadd.f32 %v1312_v59, %v1305_v12  ;;  %v5043_v23 = vadd.f32 %v1312_v59, %v1307_v14  ;;  %v5115_v57 = vpop.permute.xlu1 %2284 }
 0x19d   : > { %v1276_v24 = vadd.f32 %v1274_v60, %v1266_v15  ;;  %v1296_v27 = vadd.f32 %v1294_v3, %v1286_v16  ;;  %v1318_v28 = vadd.f32 %v1316_v9, %v1306_v17  ;;  %v5045_v29 = vadd.f32 %v1316_v9, %v1308_v19 }
 0x19e   : > { %v1321_v30 = vsel %vm359_vm0, %v1275_v20, %v1295_v21  ;;  %1328 = vst [vmem:[%s5041_s24 + $0x10] sm:$0x1] %v5043_v23  ;;  %v1331_v33 = vsel %vm1330_vm11, %v5043_v23, 0.0  ;;  %v5117_v58 = vpop.permute.xlu0 %2379  ;;  %v5140_v21 = vld [vmem:[%s5676_s4] sm:$0xff] }
 0x19f   : > { %v5053_v34 = vsel %vm1323_vm10, %v1321_v30, %v1317_v22  ;;  %v1322_v35 = vsel %vm359_vm0, %v1276_v24, %v1296_v27  ;;  %1329 = vst [vmem:[%s5041_s24 + $0x18] sm:$0x1] %v5045_v29  ;;  %v1332_v36 = vsel %vm1330_vm11, %v5045_v29, 0.0 }
 0x1a0   : > { %1326 = vst [vmem:[%s5041_s24] sm:$0xff] %v5053_v34  ;;  %v5063_v38 = vsel %vm1323_vm10, %v1322_v35, %v1318_v28  ;;  %v4494_v39 = vpack.i.bf16 %v1331_v33, %v5053_v34  ;;  %v4419_v55 = vpack.c.bf16 %v5043_v23, %v5053_v34  ;;  %v5119_v59 = vpop.permute.xlu1 %2381 }
 0x1a1   : > { %1327 = vst [vmem:[%s5041_s24 + $0x8] sm:$0xff] %v5063_v38  ;;  %v4534_v40 = vpack.i.bf16 %v1332_v36, %v5063_v38  ;;  %v4416_v46 = vpack.c.bf16 %v5045_v29, %v5063_v38  ;;  %v5200_v38 = vld [vmem:[%s5676_s4 + $0x18] sm:$0xff] }
 0x1a2   : > { %4495 = vrot.lane.b32.xlu0 %v4494_v39, %s4700_s13 }
 0x1a3   : > { %4535 = vrot.lane.b32.xlu1 %v4534_v40, %s4700_s13 }
 0x1a6   : > { %4500 = vrot.lane.b32.xlu0 %v4494_v39, %s4699_s12 }
 0x1a7   : > { %4540 = vrot.lane.b32.xlu1 %v4534_v40, %s4699_s12 }
 0x1aa   : > { %4505 = vrot.lane.b32.xlu0 %v4494_v39, %s4701_s14 }
 0x1ab   : > { %4545 = vrot.lane.b32.xlu1 %v4534_v40, %s4701_s14 }
 0x1ae   : > { %4510 = vrot.lane.b32.xlu0 %v4494_v39, %s4702_s15 }
 0x1af   : > { %4550 = vrot.lane.b32.xlu1 %v4534_v40, %s4702_s15 }
 0x1b2   : > { %4515 = vrot.lane.b32.xlu0 %v4494_v39, %s4703_s16 }
 0x1b3   : > { %4555 = vrot.lane.b32.xlu1 %v4534_v40, %s4703_s16 }
 0x1b6   : > { %4520 = vrot.lane.b32.xlu0 %v4494_v39, %s4704_s17 }
 0x1b7   : > { %4560 = vrot.lane.b32.xlu1 %v4534_v40, %s4704_s17 }
 0x1ba   : > { %4525 = vrot.lane.b32.xlu0 %v4494_v39, %s4705_s18 }
 0x1bb   : > { %4565 = vrot.lane.b32.xlu1 %v4534_v40, %s4705_s18 }
 0x1be   : > { %4530 = vrot.lane.b32.xlu0 %v4494_v39, %s4706_s19 }
 0x1bf   : > { %4570 = vrot.lane.b32.xlu1 %v4534_v40, %s4706_s19 }
 0x1c2   : > { %2476 = vrot.lane.b32.xlu0 %v4928_v50, %s4701_s14 }
 0x1c3   : > { %2478 = vrot.lane.b32.xlu1 %v4934_v51, %s4701_s14 }
 0x1c6   : > { %2573 = vrot.lane.b32.xlu0 %v4928_v50, %s4702_s15 }
 0x1c7   : > { %2575 = vrot.lane.b32.xlu1 %v4934_v51, %s4702_s15 }
 0x1ca   : > { %2747 = vrot.lane.b32.xlu0 %v4928_v50, %s4703_s16 }
 0x1cb   : > { %2749 = vrot.lane.b32.xlu1 %v4934_v51, %s4703_s16 }
 0x1ce   : > { %2844 = vrot.lane.b32.xlu0 %v4928_v50, %s4704_s17 }
 0x1cf   : > { %2846 = vrot.lane.b32.xlu1 %v4934_v51, %s4704_s17 }
 0x1d2   : > { %2941 = vrot.lane.b32.xlu0 %v4928_v50, %s4705_s18 }
 0x1d3   : > { %2943 = vrot.lane.b32.xlu1 %v4934_v51, %s4705_s18 }
 0x1d6   : > { %3038 = vrot.lane.b32.xlu0 %v4928_v50, %s4706_s19 }
 0x1d7   : > { %3040 = vrot.lane.b32.xlu1 %v4934_v51, %s4706_s19 }
 0x214   : > { %v4496_v60 = vpop.permute.xlu0 %4495 }
 0x215   : > { %v4498_v61 = vunpack.i.h.bf16 %v4496_v60  ;;  %v4497_v62 = vunpack.i.l.bf16 %v4496_v60  ;;  %v4536_v52 = vpop.permute.xlu1 %4535 }
 0x216   : > { %v4538_v63 = vunpack.i.h.bf16 %v4536_v52  ;;  %v4537_v0 = vunpack.i.l.bf16 %v4536_v52 }
 0x218   : > { %v1345_v50 = vsel %vm370_vm2, %v4537_v0, %v4497_v62  ;;  %v1346_v51 = vsel %vm370_vm2, %v4538_v63, %v4498_v61  ;;  %v4501_v2 = vpop.permute.xlu0 %4500  ;;  %v1343_v3 = vsel %vm370_vm2, %v4497_v62, %v4537_v0  ;;  %v1344_v4 = vsel %vm370_vm2, %v4498_v61, %v4538_v63  ;;  %v5155_v62 = vld [vmem:[%s5676_s4 + $0x8] sm:$0xff] }
 0x219   : > { %v4402_v7 = vpack.c.bf16 %v1346_v51, %v1345_v50  ;;  %v4503_v8 = vunpack.i.h.bf16 %v4501_v2  ;;  %v4502_v9 = vunpack.i.l.bf16 %v4501_v2  ;;  %v4541_v10 = vpop.permute.xlu1 %4540  ;;  %v4400_v11 = vpack.c.bf16 %v1344_v4, %v1343_v3 }
 0x21a   : > { %v4543_v12 = vunpack.i.h.bf16 %v4541_v10  ;;  %v4542_v14 = vunpack.i.l.bf16 %v4541_v10 }
 0x21b   : > { %4401 = vmatprep.subr.bf16.mxu1 %v4400_v11 }
 0x21c   : > { %v1449_v15 = vsel %vm469_vm1, %v4542_v14, %v4502_v9  ;;  %v1450_v16 = vsel %vm469_vm1, %v4543_v12, %v4503_v8  ;;  %v4506_v17 = vpop.permute.xlu0 %4505  ;;  %4403 = vmatpush1.bf16.msra.mxu1 %v4402_v7  ;;  %v1447_v19 = vsel %vm469_vm1, %v4502_v9, %v4542_v14  ;;  %v1448_v20 = vsel %vm469_vm1, %v4503_v8, %v4543_v12  ;;  %v5176_v12 = vld [vmem:[%s5676_s4 + $0x10] sm:$0xff] }
 0x21d   : > { %v4406_v22 = vpack.c.bf16 %v1450_v16, %v1449_v15  ;;  %v4508_v24 = vunpack.i.h.bf16 %v4506_v17  ;;  %v4507_v27 = vunpack.i.l.bf16 %v4506_v17  ;;  %v4546_v28 = vpop.permute.xlu1 %4545  ;;  %v4404_v30 = vpack.c.bf16 %v1448_v20, %v1447_v19 }
 0x21e   : > { %v4548_v33 = vunpack.i.h.bf16 %v4546_v28  ;;  %v4547_v35 = vunpack.i.l.bf16 %v4546_v28 }
 0x21f   : > { %4405 = vmatprep.subr.bf16.mxu0 %v4404_v30  ;;  %4304 = vmatmul.mubr.msk.f32.vlgmr.msra.gmra.mrb[8].mxu1 %vm1348_vm12, %v5140_v21 }
 0x220   : > { %v1553_v36 = vsel %vm569_vm4, %v4547_v35, %v4507_v27  ;;  %v1554_v39 = vsel %vm569_vm4, %v4548_v33, %v4508_v24  ;;  %v4511_v40 = vpop.permute.xlu0 %4510  ;;  %4407 = vmatpush1.bf16.msra.mxu0 %v4406_v22  ;;  %v1551_v60 = vsel %vm569_vm4, %v4507_v27, %v4547_v35  ;;  %v1552_v61 = vsel %vm569_vm4, %v4508_v24, %v4548_v33 }
 0x221   : > { %v4410_v52 = vpack.c.bf16 %v1554_v39, %v1553_v36  ;;  %v4513_v63 = vunpack.i.h.bf16 %v4511_v40  ;;  %v4512_v0 = vunpack.i.l.bf16 %v4511_v40  ;;  %v4551_v50 = vpop.permute.xlu1 %4550  ;;  %v4408_v51 = vpack.c.bf16 %v1552_v61, %v1551_v60  ;;  %1624 = vmatprep.mubr.f32.mxu1 %v4698_v1 }
 0x222   : > { %v4553_v2 = vunpack.i.h.bf16 %v4551_v50  ;;  %v4552_v3 = vunpack.i.l.bf16 %v4551_v50 }
 0x223   : > { %4409 = vmatprep.subr.bf16.mxu1 %v4408_v51  ;;  %4306 = vmatmul.mubr.msk.f32.vlgmr.msra.gmra.mrb[10].mxu0 %vm1348_vm12, %v5155_v62 }
 0x224   : > { %v1657_v7 = vsel %vm669_vm5, %v4552_v3, %v4512_v0  ;;  %v1658_v8 = vsel %vm669_vm5, %v4553_v2, %v4513_v63  ;;  %v4516_v9 = vpop.permute.xlu0 %4515  ;;  %4411 = vmatpush1.bf16.msra.mxu1 %v4410_v52  ;;  %v1655_v10 = vsel %vm669_vm5, %v4512_v0, %v4552_v3  ;;  %v1656_v11 = vsel %vm669_vm5, %v4513_v63, %v4553_v2 }
 0x225   : > { %v4414_v14 = vpack.c.bf16 %v1658_v8, %v1657_v7  ;;  %v4518_v15 = vunpack.i.h.bf16 %v4516_v9  ;;  %v4517_v16 = vunpack.i.l.bf16 %v4516_v9  ;;  %v4556_v17 = vpop.permute.xlu1 %4555  ;;  %4418 = vmatprep.subr.msk.bf16.mxu1 %vm5159_vm14, %v4416_v46  ;;  %v4412_v19 = vpack.c.bf16 %v1656_v11, %v1655_v10  ;;  %1728 = vmatprep.mubr.f32.mxu0 %v4698_v1  ;;  %v5205_v46 = vld [vmem:[%s5676_s4 + $0x20] sm:$0xff]  ;;  %v5226_v7 = vld [vmem:[%s5676_s4 + $0x28] sm:$0xff] }
 0x226   : > { %v4558_v20 = vunpack.i.h.bf16 %v4556_v17  ;;  %v4557_v22 = vunpack.i.l.bf16 %v4556_v17 }
 0x227   : > { %4413 = vmatprep.subr.bf16.mxu0 %v4412_v19  ;;  %4309 = vmatmul.mubr.msk.f32.vlgmr.msra.gmra.mrb[10].mxu1 %vm1348_vm12, %v5176_v12 }
 0x228   : > { %v1837_v24 = vsel %vm847_vm6, %v4517_v16, %v4557_v22  ;;  %v1838_v27 = vsel %vm847_vm6, %v4518_v15, %v4558_v20  ;;  %v4521_v28 = vpop.permute.xlu0 %4520  ;;  %4415 = vmatpush1.bf16.msra.mxu0 %v4414_v14  ;;  %4421 = vmatpush1.bf16.msk.msra.mxu1 %vm5159_vm14, %v4419_v55  ;;  %v1839_v29 = vsel %vm847_vm6, %v4557_v22, %v4517_v16  ;;  %v5240_v16 = vld [vmem:[%s5676_s4 + $0x30] sm:$0xff] }
 0x229   : > { %v4424_v30 = vpack.c.bf16 %v1838_v27, %v1837_v24  ;;  %v4523_v33 = vunpack.i.h.bf16 %v4521_v28  ;;  %v4522_v35 = vunpack.i.l.bf16 %v4521_v28  ;;  %v4561_v23 = vpop.permute.xlu1 %4560  ;;  %v1840_v34 = vsel %vm847_vm6, %v4558_v20, %v4518_v15  ;;  %1820 = vmatprep.mubr.f32.mxu1 %v4698_v1 }
 0x22a   : > { %v4563_v55 = vunpack.i.h.bf16 %v4561_v23  ;;  %v4562_v36 = vunpack.i.l.bf16 %v4561_v23  ;;  %v4422_v39 = vpack.c.bf16 %v1840_v34, %v1839_v29 }
 0x22b   : > { %4312 = vmatmul.mubr.msk.f32.vlgmr.msra.gmra.mrb[12].mxu0 %vm1348_vm12, %v5200_v38  ;;  %4317 = vmatmul.mubr.msk.f32.vlgmr.msra.gmra.mrb[12].mxu1 %vm1348_vm12, %v5205_v46 }
 0x22c   : > { %v1941_v40 = vsel %vm947_vm7, %v4522_v35, %v4562_v36  ;;  %v1942_v60 = vsel %vm947_vm7, %v4523_v33, %v4563_v55  ;;  %4423 = vmatprep.subr.bf16.mxu0 %v4422_v39  ;;  %v4526_v61 = vpop.permute.xlu0 %4525  ;;  %v1943_v52 = vsel %vm947_vm7, %v4562_v36, %v4522_v35  ;;  %v1944_v63 = vsel %vm947_vm7, %v4563_v55, %v4523_v33 }
 0x22d   : > { %v4428_v0 = vpack.c.bf16 %v1942_v60, %v1941_v40  ;;  %v4528_v50 = vunpack.i.h.bf16 %v4526_v61  ;;  %v4527_v51 = vunpack.i.l.bf16 %v4526_v61  ;;  %4425 = vmatpush1.bf16.msra.mxu0 %v4424_v30  ;;  %v4566_v2 = vpop.permute.xlu1 %4565  ;;  %v4426_v3 = vpack.c.bf16 %v1944_v63, %v1943_v52  ;;  %1910 = vmatprep.mubr.f32.mxu0 %v4698_v1  ;;  %v5262_v40 = vld [vmem:[%s5676_s4 + $0x38] sm:$0xff] }
 0x22e   : > { %v4568_v8 = vunpack.i.h.bf16 %v4566_v2  ;;  %v4567_v9 = vunpack.i.l.bf16 %v4566_v2  ;;  %2014 = vmatprep.mubr.f32.mxu1 %v4698_v1  ;;  %v2286_v39 = vsel %vm370_vm2, %v5113_v56, %v5115_v57  ;;  %v2287_v61 = vsel %vm370_vm2, %v5115_v57, %v5113_v56 }
 0x22f   : > { %4427 = vmatprep.subr.bf16.mxu1 %v4426_v3  ;;  %v2383_v63 = vsel %vm469_vm1, %v5117_v58, %v5119_v59  ;;  %v2384_v57 = vsel %vm469_vm1, %v5119_v59, %v5117_v58 }
 0x230   : > { %v2045_v10 = vsel %vm1047_vm8, %v4527_v51, %v4567_v9  ;;  %v2046_v11 = vsel %vm1047_vm8, %v4528_v50, %v4568_v8  ;;  %v4531_v14 = vpop.permute.xlu0 %4530  ;;  %4429 = vmatpush1.bf16.msra.mxu1 %v4428_v0  ;;  %4319 = vmatmul.mubr.msk.f32.vlgmr.msra.gmra.mrb[14].mxu0 %vm1348_vm12, %v5226_v7  ;;  %v2047_v15 = vsel %vm1047_vm8, %v4567_v9, %v4527_v51  ;;  %v5278_v0 = vld [vmem:[%s5676_s4 + $0x40] sm:$0xff] }
 0x231   : > { %v4432_v17 = vpack.c.bf16 %v2046_v11, %v2045_v10  ;;  %v4533_v19 = vunpack.i.h.bf16 %v4531_v14  ;;  %v4532_v20 = vunpack.i.l.bf16 %v4531_v14  ;;  %v4571_v22 = vpop.permute.xlu1 %4570  ;;  %v2048_v24 = vsel %vm1047_vm8, %v4568_v8, %v4528_v50  ;;  %2118 = vmatprep.mubr.f32.mxu0 %v4698_v1 }
 0x232   : > { %v4573_v27 = vunpack.i.h.bf16 %v4571_v22  ;;  %v4572_v28 = vunpack.i.l.bf16 %v4571_v22  ;;  %v4430_v29 = vpack.c.bf16 %v2048_v24, %v2047_v15  ;;  %v5359_v24 = vld [vmem:[%s5677_s5 + $0x8] sm:$0xff] }
 0x233   : > { %4322 = vmatmul.mubr.msk.f32.vlgmr.msra.gmra.mrb[14].mxu1 %vm1348_vm12, %v5240_v16 }
 0x234   : > { %v2149_v30 = vsel %vm1147_vm9, %v4532_v20, %v4572_v28  ;;  %v2150_v33 = vsel %vm1147_vm9, %v4533_v19, %v4573_v27  ;;  %4431 = vmatprep.subr.bf16.mxu0 %v4430_v29  ;;  %v2477_v35 = vpop.permute.xlu0 %2476  ;;  %v2151_v23 = vsel %vm1147_vm9, %v4572_v28, %v4532_v20  ;;  %v2152_v34 = vsel %vm1147_vm9, %v4573_v27, %v4533_v19  ;;  %v5354_v20 = vld [vmem:[%s5677_s5] sm:$0xff] }
 0x235   : > { %v4436_v55 = vpack.c.bf16 %v2150_v33, %v2149_v30  ;;  %4433 = vmatpush1.bf16.msra.mxu0 %v4432_v17  ;;  %v2479_v36 = vpop.permute.xlu1 %2478  ;;  %v4434_v60 = vpack.c.bf16 %v2152_v34, %v2151_v23  ;;  %2222 = vmatprep.mubr.f32.mxu1 %v4698_v1  ;;  %v4310_v33 = vld [vmem:[%s5678_s6 + $0x2] ss:$8 sm:$0x3] }
 0x236   : > { %2292 = vmatprep.subr.mxu0 %v2286_v39  ;;  %v2480_v56 = vsel %vm569_vm4, %v2477_v35, %v2479_v36  ;;  %v2481_v51 = vsel %vm569_vm4, %v2479_v36, %v2477_v35  ;;  %v1636_v39 = vrot.slane %v4310_v33, %v4946_v53 }
 0x237   : > { %4435 = vmatprep.subr.bf16.mxu1 %v4434_v60 }
 0x238   : > { %4325 = vmatmul.mubr.msk.f32.vlgmr.msra.gmra.mrb[16].mxu0 %vm1348_vm12, %v5262_v40  ;;  %4437 = vmatpush1.bf16.msra.mxu1 %v4436_v55  ;;  %v2574_v52 = vpop.permute.xlu0 %2573 }
 0x239   : > { %2293 = vmatpush1.msra.mxu0 %v2287_v61  ;;  %v2576_v50 = vpop.permute.xlu1 %2575  ;;  %2389 = vmatprep.subr.mxu1 %v2383_v63  ;;  %v1640_v61 = vrot.slane %v4310_v33, %v4949_v54 }
 0x23a   : > { %2486 = vmatprep.subr.mxu0 %v2480_v56  ;;  %2356 = vmatprep.mubr.f32.mxu0 %v4698_v1  ;;  %v2577_v3 = vsel %vm669_vm5, %v2574_v52, %v2576_v50  ;;  %v2578_v59 = vsel %vm669_vm5, %v2576_v50, %v2574_v52  ;;  %v4313_v52 = vld [vmem:[%s5678_s6 + $0x3] ss:$8 sm:$0x3] }
 0x23b   : > { %4328 = vmatmul.mubr.msk.f32.vlgmr.msra.gmra.mrb[16].mxu1 %vm1348_vm12, %v5278_v0 }
 0x23c   : > { %4332 = vmatmul.mubr.msk.f32.vlgmr.msra.gmra.mrb[18].mxu0 %vm374_vm3, %v4824_v18  ;;  %2390 = vmatpush1.msra.mxu1 %v2384_v57  ;;  %v2748_v2 = vpop.permute.xlu0 %2747 }
 0x23d   : > { %2487 = vmatpush1.msra.mxu0 %v2481_v51  ;;  %v2750_v8 = vpop.permute.xlu1 %2749  ;;  %2583 = vmatprep.subr.mxu1 %v2577_v3 }
 0x23e   : > { %2453 = vmatprep.mubr.f32.mxu1 %v4698_v1  ;;  %2550 = vmatprep.mubr.f32.mxu0 %v4698_v1  ;;  %v2752_v58 = vsel %vm847_vm6, %v2750_v8, %v2748_v2 }
 0x23f   : > { %4334 = vmatmul.mubr.msk.f32.vlgmr.msra.gmra.mrb[18].mxu1 %vm374_vm3, %v4811_v13  ;;  %4343 = vmatprep.subr.msk.mxu0 %vm359_vm0, %v4924_v49  ;;  %v2751_v49 = vsel %vm847_vm6, %v2748_v2, %v2750_v8  ;;  %v1740_v2 = vrot.slane %v4313_v52, %v4946_v53  ;;  %v1744_v8 = vrot.slane %v4313_v52, %v4949_v54 }
 0x240   : > { %2584 = vmatpush1.msra.mxu1 %v2578_v59  ;;  %4337 = vmatmul.mubr.msk.f32.vlgmr.msra.gmra.mrb[20].mxu0 %vm374_vm3, %v4842_v25  ;;  %v2845_v18 = vpop.permute.xlu0 %2844  ;;  %v4320_v59 = vld [vmem:[%s5678_s6 + $0x5] ss:$8 sm:$0x3] }
 0x241   : > { %2757 = vmatprep.subr.mxu1 %v2752_v58  ;;  %v2847_v9 = vpop.permute.xlu1 %2846  ;;  %2647 = vmatprep.mubr.f32.mxu1 %v4698_v1 }
 0x242   : > { %v2848_v10 = vsel %vm947_vm7, %v2845_v18, %v2847_v9  ;;  %4344 = vmatpush1.msk.msra.mxu0 %vm359_vm0, %v4920_v48  ;;  %2738 = vmatprep.mubr.f32.mxu0 %v4698_v1  ;;  %v2849_v13 = vsel %vm947_vm7, %v2847_v9, %v2845_v18 }
 0x243   : > { %4340 = vmatmul.mubr.msk.f32.vlgmr.msra.gmra.mrb[20].mxu1 %vm374_vm3, %v4847_v26  ;;  %2854 = vmatprep.subr.mxu0 %v2849_v13 }
 0x244   : > { %2758 = vmatpush1.msra.mxu1 %v2751_v49  ;;  %4345 = vmatmul.mubr.msk.f32.vlgmr.msra.gmra.mrb[22].mxu0 %vm374_vm3, %v4866_v31  ;;  %v2942_v25 = vpop.permute.xlu0 %2941 }
 0x245   : > { %2855 = vmatpush1.msra.mxu0 %v2848_v10  ;;  %v2944_v11 = vpop.permute.xlu1 %2943  ;;  %2821 = vmatprep.mubr.f32.mxu1 %v4698_v1 }
 0x246   : > { %v2945_v48 = vsel %vm1047_vm8, %v2942_v25, %v2944_v11  ;;  %v2946_v14 = vsel %vm1047_vm8, %v2944_v11, %v2942_v25  ;;  %2918 = vmatprep.mubr.f32.mxu0 %v4698_v1 }
 0x247   : > { %4347 = vmatmul.mubr.msk.f32.vlgmr.msra.gmra.mrb[22].mxu1 %vm374_vm3, %v4871_v32  ;;  %2951 = vmatprep.subr.mxu1 %v2946_v14  ;;  %v1423_v32 = vld [vmem:[%s5678_s6] ss:$8 sm:$0x3]  ;;  %v4323_v14 = vld [vmem:[%s5678_s6 + $0x6] ss:$8 sm:$0x3] }
 0x248   : > { %2952 = vmatpush1.msra.mxu1 %v2945_v48  ;;  %v3039_v26 = vpop.permute.xlu0 %3038  ;;  %4350 = vmatmul.mubr.msk.f32.vlgmr.msra.gmra.mrb[24].mxu0 %vm374_vm3, %v4887_v37  ;;  %v1428_v37 = vrot.slane %v1423_v32, %v4946_v53  ;;  %v1432_v19 = vrot.slane %v1423_v32, %v4949_v54  ;;  %v1922_v48 = vrot.slane %v4320_v59, %v4946_v53 }
 0x249   : > { %v3041_v31 = vpop.permute.xlu1 %3040  ;;  %3015 = vmatprep.mubr.f32.mxu1 %v4698_v1  ;;  %3112 = vmatprep.mubr.f32.mxu0 %v4698_v1 }
 0x24a   : > { %v3042_v15 = vsel %vm1147_vm9, %v3039_v26, %v3041_v31  ;;  %v3043_v17 = vsel %vm1147_vm9, %v3041_v31, %v3039_v26  ;;  %v1926_v31 = vrot.slane %v4320_v59, %v4949_v54 }
 0x24b   : > { %4353 = vmatmul.mubr.msk.f32.vlgmr.msra.gmra.mrb[24].mxu1 %vm374_vm3, %v4900_v42  ;;  %3048 = vmatprep.subr.mxu0 %v3043_v17  ;;  %v4307_v42 = vld [vmem:[%s5678_s6 + $0x1] ss:$8 sm:$0x3] }
 0x24c   : > { %3049 = vmatpush1.msra.mxu0 %v3042_v15  ;;  %3307 = vmatprep.mubr.f32.mxu1 %v4698_v1  ;;  %v1532_v28 = vrot.slane %v4307_v42, %v4946_v53  ;;  %v1536_v30 = vrot.slane %v4307_v42, %v4949_v54 }
 0x24d   : > { %4356 = vmatmul.mubr.msk.f32.vlgmr.msra.gmra.mrb[26].mxu0 %vm374_vm3, %v4913_v47  ;;  %vm5424_vm3 = vmor %vm1330_vm11, %vm2264_vm15 }
 0x24e   : > { %3410 = vmatprep.mubr.f32.mxu0 %v4698_v1 }
 0x2f2   : > { %v1418_v47 = vpop.f32.mrb[8].mxu1 }
 0x2f3   : > { %v1435_v22 = vmul.f32 %v1428_v37, %v1418_v47  ;;  %v1420_v27 = vpop.f32.mrb[9].mxu1  ;;  %v2026_v37 = vrot.slane %v4323_v14, %v4946_v53 }
 0x2f4   : > { %v1436_v29 = vmul.f32 %v1432_v19, %v1420_v27 }
 0x2f5   : > { %v1437_v35 = vadd.f32 %v1435_v22, %v5354_v20  ;;  %v2030_v22 = vrot.slane %v4323_v14, %v4949_v54  ;;  %v4341_v14 = vld [vmem:[%s5678_s6 + $0x3] ss:$8 sm:$0x3] }
 0x2f6   : > { %v1438_v23 = vadd.f32 %v1436_v29, %v5359_v24  ;;  %v1522_v34 = vpop.f32.mrb[10].mxu0 }
 0x2f7   : > { %v1539_v55 = vmul.f32 %v1532_v28, %v1522_v34  ;;  %v1524_v36 = vpop.f32.mrb[11].mxu0  ;;  %v4326_v28 = vld [vmem:[%s5678_s6 + $0x7] ss:$8 sm:$0x3] }
 0x2f8   : > { %v1540_v60 = vmul.f32 %v1536_v30, %v1524_v36  ;;  %v4329_v36 = vld [vmem:[%s5678_s6 + $0x10] ss:$8 sm:$0x3] }
 0x2f9   : > { %v1541_v63 = vadd.f32 %v1539_v55, %v1437_v35  ;;  %v2130_v55 = vrot.slane %v4326_v28, %v4946_v53 }
 0x2fa   : > { %v1542_v50 = vadd.f32 %v1540_v60, %v1438_v23  ;;  %v1626_v56 = vpop.f32.mrb[10].mxu1  ;;  %v2134_v60 = vrot.slane %v4326_v28, %v4949_v54  ;;  %v2659_v28 = vrot.slane %v4341_v14, %v4946_v53 }
 0x2fb   : > { %v1643_v57 = vmul.f32 %v1636_v39, %v1626_v56  ;;  %v1628_v51 = vpop.f32.mrb[11].mxu1 }
 0x2fc   : > { %v1644_v3 = vmul.f32 %v1640_v61, %v1628_v51  ;;  %v2363_v61 = vld [vmem:[%s5678_s6] ss:$8 sm:$0x3]  ;;  %v2238_v51 = vrot.slane %v4329_v36, %v4949_v54 }
 0x2fd   : > { %v1645_v58 = vadd.f32 %v1643_v57, %v1541_v63 }
 0x2fe   : > { %v1646_v18 = vadd.f32 %v1644_v3, %v1542_v50  ;;  %v1730_v9 = vpop.f32.mrb[12].mxu0  ;;  %v1822_v10 = vpop.f32.mrb[12].mxu1  ;;  %v2234_v50 = vrot.slane %v4329_v36, %v4946_v53  ;;  %v4335_v3 = vld [vmem:[%s5678_s6 + $0x1] ss:$8 sm:$0x3] }
 0x2ff   : > { %v1747_v13 = vmul.f32 %v1740_v2, %v1730_v9  ;;  %v1732_v49 = vpop.f32.mrb[13].mxu0  ;;  %v1824_v25 = vpop.f32.mrb[13].mxu1  ;;  %v2368_v2 = vrot.slane %v2363_v61, %v4946_v53  ;;  %v4338_v9 = vld [vmem:[%s5678_s6 + $0x2] ss:$8 sm:$0x3] }
 0x300   : > { %v1748_v11 = vmul.f32 %v1744_v8, %v1732_v49 }
 0x301   : > { %v1749_v26 = vadd.f32 %v1747_v13, %v1645_v58  ;;  %v2372_v58 = vrot.slane %v2363_v61, %v4949_v54 }
 0x302   : > { %v1750_v15 = vadd.f32 %v1748_v11, %v1646_v18 }
 0x303   : > { %v1827_v17 = vadd.f32 %v1822_v10, %v1749_v26  ;;  %v1912_v32 = vpop.f32.mrb[14].mxu0 }
 0x304   : > { %v1929_v19 = vmul.f32 %v1922_v48, %v1912_v32  ;;  %v1828_v42 = vadd.f32 %v1824_v25, %v1750_v15  ;;  %v1914_v47 = vpop.f32.mrb[15].mxu0  ;;  %v2280_v25 = vld [vmem:[%s5675_s3] sm:$0xff]  ;;  %v2465_v48 = vrot.slane %v4335_v3, %v4946_v53 }
 0x305   : > { %v1930_v27 = vmul.f32 %v1926_v31, %v1914_v47 }
 0x306   : > { %v1931_v29 = vadd.f32 %v1929_v19, %v1827_v17  ;;  %v2016_v30 = vpop.f32.mrb[14].mxu1  ;;  %v2469_v17 = vrot.slane %v4335_v3, %v4949_v54  ;;  %v2562_v19 = vrot.slane %v4338_v9, %v4946_v53 }
 0x307   : > { %v1932_v33 = vadd.f32 %v1930_v27, %v1828_v42  ;;  %v2033_v35 = vmul.f32 %v2026_v37, %v2016_v30  ;;  %v2018_v23 = vpop.f32.mrb[15].mxu1  ;;  %v2566_v42 = vrot.slane %v4338_v9, %v4949_v54 }
 0x308   : > { %v2034_v34 = vmul.f32 %v2030_v22, %v2018_v23 }
 0x309   : > { %v2035_v39 = vadd.f32 %v2033_v35, %v1931_v29 }
 0x30a   : > { %v2036_v52 = vadd.f32 %v2034_v34, %v1932_v33  ;;  %v2663_v34 = vrot.slane %v4341_v14, %v4949_v54 }
 0x30b   : > { %v2120_v63 = vpop.f32.mrb[16].mxu0 }
 0x30c   : > { %v2137_v56 = vmul.f32 %v2130_v55, %v2120_v63  ;;  %v2122_v57 = vpop.f32.mrb[17].mxu0 }
 0x30d   : > { %v2138_v8 = vmul.f32 %v2134_v60, %v2122_v57  ;;  %v4351_v57 = vld [vmem:[%s5678_s6 + $0x6] ss:$8 sm:$0x3] }
 0x30e   : > { %v2139_v59 = vadd.f32 %v2137_v56, %v2035_v39  ;;  %v2224_v18 = vpop.f32.mrb[16].mxu1  ;;  %v2930_v14 = vrot.slane %v4351_v57, %v4946_v53 }
 0x30f   : > { %v2140_v10 = vadd.f32 %v2138_v8, %v2036_v52  ;;  %v2241_v13 = vmul.f32 %v2234_v50, %v2224_v18  ;;  %v2226_v49 = vpop.f32.mrb[17].mxu1  ;;  %v2358_v11 = vpop.f32.mrb[18].mxu0  ;;  %v4348_v52 = vld [vmem:[%s5678_s6 + $0x5] ss:$8 sm:$0x3] }
 0x310   : > { %v2242_v26 = vmul.f32 %v2238_v51, %v2226_v49  ;;  %v2375_v31 = vmul.f32 %v2368_v2, %v2358_v11  ;;  %v2360_v15 = vpop.f32.mrb[19].mxu0 }
 0x311   : > { %v2243_v32 = vadd.f32 %v2241_v13, %v2139_v59  ;;  %v2376_v37 = vmul.f32 %v2372_v58, %v2360_v15  ;;  %v2837_v13 = vrot.slane %v4348_v52, %v4949_v54  ;;  %v2934_v15 = vrot.slane %v4351_v57, %v4949_v54 }
 0x312   : > { %v2244_v47 = vadd.f32 %v2242_v26, %v2140_v10  ;;  %v2377_v22 = vadd.f32 %v2375_v31, %v2280_v25  ;;  %v2455_v27 = vpop.f32.mrb[18].mxu1  ;;  %v2833_v10 = vrot.slane %v4348_v52, %v4946_v53  ;;  %v4354_v26 = vld [vmem:[%s5678_s6 + $0x7] ss:$8 sm:$0x3] }
 0x313   : > { %v2245_v29 = vmul.f32 0.5, %v2243_v32  ;;  %v2378_v30 = vadd.f32 %v2376_v37, %v4973_v5  ;;  %v2472_v33 = vmul.f32 %v2465_v48, %v2455_v27  ;;  %v2457_v35 = vpop.f32.mrb[19].mxu1  ;;  %v2552_v23 = vpop.f32.mrb[20].mxu0  ;;  %v4357_v37 = vld [vmem:[%s5678_s6 + $0x10] ss:$8 sm:$0x3]  ;;  %v3027_v27 = vrot.slane %v4354_v26, %v4946_v53 }
 0x314   : > { %v2246_v55 = vmul.f32 0.5, %v2244_v47  ;;  %v2262_v36 = vcombine.low %v2243_v32, %v2244_v47  ;;  %v2263_v39 = vcombine.high %v2243_v32, %v2244_v47  ;;  %v2473_v60 = vmul.f32 %v2469_v17, %v2457_v35  ;;  %v2554_v61 = vpop.f32.mrb[21].mxu0 }
 0x315   : > { %4664 = vtanh.f32 %v2245_v29  ;;  %v2474_v5 = vadd.f32 %v2472_v33, %v2377_v22  ;;  %v2569_v50 = vmul.f32 %v2562_v19, %v2552_v23  ;;  %v2570_v56 = vmul.f32 %v2566_v42, %v2554_v61 }
 0x316   : > { %4666 = vtanh.f32 %v2246_v55  ;;  %v5431_v51 = vrot.slane %v2262_v36, 11  ;;  %v5433_v2 = vrot.slane %v2263_v39, 7  ;;  %v2475_v3 = vadd.f32 %v2473_v60, %v2378_v30  ;;  %v2649_v8 = vpop.f32.mrb[20].mxu1 }
 0x317   : > { %v2571_v58 = vadd.f32 %v2569_v50, %v2474_v5  ;;  %v2666_v59 = vmul.f32 %v2659_v28, %v2649_v8  ;;  %v2651_v18 = vpop.f32.mrb[21].mxu1  ;;  %v2740_v9 = vpop.f32.mrb[22].mxu0  ;;  %v3031_v35 = vrot.slane %v4354_v26, %v4949_v54  ;;  %v3124_v55 = vrot.slane %v4357_v37, %v4946_v53 }
 0x318   : > { %v2269_v49 = vsel %vm5424_vm3, %v5431_v51, %v5433_v2  ;;  %v2572_v25 = vadd.f32 %v2570_v56, %v2475_v3  ;;  %v2667_v11 = vmul.f32 %v2663_v34, %v2651_v18  ;;  %v2742_v48 = vpop.f32.mrb[23].mxu0  ;;  %v3128_v60 = vrot.slane %v4357_v37, %v4949_v54 }
 0x319   : > { %v2668_v31 = vadd.f32 %v2666_v59, %v2571_v58 }
 0x31a   : > { %v2669_v17 = vadd.f32 %v2667_v11, %v2572_v25  ;;  %v2823_v32 = vpop.f32.mrb[22].mxu1 }
 0x31b   : > { %v2745_v19 = vadd.f32 %v2740_v9, %v2668_v31  ;;  %v2840_v42 = vmul.f32 %v2833_v10, %v2823_v32  ;;  %v2825_v47 = vpop.f32.mrb[23].mxu1  ;;  %v2920_v22 = vpop.f32.mrb[24].mxu0 }
 0x31c   : > { %v2746_v28 = vadd.f32 %v2742_v48, %v2669_v17  ;;  %v2841_v29 = vmul.f32 %v2837_v13, %v2825_v47  ;;  %v2937_v30 = vmul.f32 %v2930_v14, %v2920_v22  ;;  %v2922_v33 = vpop.f32.mrb[25].mxu0 }
 0x31d   : > { %v2842_v23 = vadd.f32 %v2840_v42, %v2745_v19  ;;  %v2938_v34 = vmul.f32 %v2934_v15, %v2922_v33  ;;  %v4688_v19 = vld [vmem:[%s4769_s11] sm:$0x77] }
 0x31e   : > { %v2843_v36 = vadd.f32 %v2841_v29, %v2746_v28  ;;  %v3017_v39 = vpop.f32.mrb[24].mxu1  ;;  %v4358_v33 = vld [vmem:[%s5015_s21 + $0x20] sm:$0xff] }
 0x31f   : > { %v4665_v61 = vpop.eup %4664  ;;  %v2939_v52 = vadd.f32 %v2937_v30, %v2842_v23  ;;  %v3034_v5 = vmul.f32 %v3027_v27, %v3017_v39  ;;  %v3019_v50 = vpop.f32.mrb[25].mxu1 }
 0x320   : > { %v4667_v56 = vpop.eup %4666  ;;  %v2249_v57 = vmul.f32 0.8, %v4665_v61  ;;  %v2940_v51 = vadd.f32 %v2938_v34, %v2843_v36  ;;  %v3035_v2 = vmul.f32 %v3031_v35, %v3019_v50  ;;  %v3114_v3 = vpop.f32.mrb[26].mxu0  ;;  %v4360_v35 = vld [vmem:[%s5015_s21 + $0x30] sm:$0x1] }
 0x321   : > { %v2250_v8 = vmul.f32 0.8, %v4667_v56  ;;  %v3036_v58 = vadd.f32 %v3034_v5, %v2939_v52  ;;  %v3131_v59 = vmul.f32 %v3124_v55, %v3114_v3  ;;  %v3116_v18 = vpop.f32.mrb[27].mxu0  ;;  %v4359_v52 = vld [vmem:[%s5015_s21 + $0x28] sm:$0xff]  ;;  %v4361_v5 = vld [vmem:[%s5015_s21 + $0x38] sm:$0x1] }
 0x322   : > { %v2251_v9 = vmul.f32 1.442695, %v2249_v57  ;;  %v3037_v10 = vadd.f32 %v3035_v2, %v2940_v51  ;;  %v3132_v13 = vmul.f32 %v3128_v60, %v3116_v18 }
 0x323   : > { %v2253_v25 = vmul.f32 1.442695, %v2250_v8  ;;  %v3133_v11 = vadd.f32 %v3131_v59, %v3036_v58 }
 0x324   : > { %4668 = vpow2.f32 %v2251_v9  ;;  %v3134_v48 = vadd.f32 %v3132_v13, %v3037_v10 }
 0x325   : > { %4670 = vpow2.f32 %v2253_v25  ;;  %v3135_v14 = vmul.f32 0.5, %v3133_v11  ;;  %v3163_v23 = vrot.slane %v3133_v11, %v5002_v41  ;;  %v3183_v34 = vrot.slane %v3133_v11, %v5005_v43 }
 0x326   : > { %v3136_v26 = vmul.f32 0.5, %v3134_v48  ;;  %v3205_v55 = vrot.slane %v3133_v11, %v5008_v44  ;;  %v3167_v36 = vrot.slane %v3134_v48, %v5002_v41  ;;  %v3187_v50 = vrot.slane %v3134_v48, %v5005_v43 }
 0x327   : > { %4672 = vtanh.f32 %v3135_v14  ;;  %v3209_v2 = vrot.slane %v3134_v48, %v5008_v44 }
 0x328   : > { %4674 = vtanh.f32 %v3136_v26 }
 0x32e   : > { %v4669_v31 = vpop.eup %4668 }
 0x32f   : > { %v4671_v15 = vpop.eup %4670 }
 0x330   : > { %v2257_v17 = vcombine.low %v4669_v31, %v4671_v15 }
 0x331   : > { %v4673_v32 = vpop.eup %4672 }
 0x332   : > { %v4675_v37 = vpop.eup %4674  ;;  %v2259_v42 = vmul.f32 %v4688_v19, %v2257_v17  ;;  %v3139_v47 = vmul.f32 0.8, %v4673_v32 }
 0x333   : > { %v3140_v22 = vmul.f32 0.8, %v4675_v37 }
 0x334   : > { %v2271_v27 = vadd.f32 %v2269_v49, %v2259_v42  ;;  %v3141_v28 = vmul.f32 1.442695, %v3139_v47 }
 0x335   : > { %v3143_v29 = vmul.f32 1.442695, %v3140_v22 }
 0x336   : > { %2272 = vst [vmem:[%s5459_s28] sm:$0x77] %v2271_v27  ;;  %4676 = vpow2.f32 %v3141_v28 }
 0x337   : > { %4678 = vpow2.f32 %v3143_v29 }
 0x340   : > { %v4677_v30 = vpop.eup %4676 }
 0x341   : > { %v4679_v39 = vpop.eup %4678  ;;  %v3153_v49 = vrot.slane %v4677_v30, %v4946_v53  ;;  %v3173_v60 = vrot.slane %v4677_v30, %v4949_v54  ;;  %v3193_v61 = vrot.slane %v4677_v30, %v5018_v45 }
 0x342   : > { %v3157_v56 = vrot.slane %v4679_v39, %v4946_v53  ;;  %v3177_v57 = vrot.slane %v4679_v39, %v4949_v54  ;;  %v3197_v51 = vrot.slane %v4679_v39, %v5018_v45 }
 0x343   : > { %v3158_v41 = vmul.f32 %v4358_v33, %v3153_v49  ;;  %v3178_v3 = vmul.f32 %v4358_v33, %v3173_v60  ;;  %v3198_v8 = vmul.f32 %v4358_v33, %v3193_v61  ;;  %v3200_v58 = vmul.f32 %v4360_v35, %v3193_v61 }
 0x344   : > { %v3159_v59 = vmul.f32 %v4359_v52, %v3157_v56  ;;  %v3179_v18 = vmul.f32 %v4359_v52, %v3177_v57  ;;  %v3199_v9 = vmul.f32 %v4359_v52, %v3197_v51  ;;  %v3201_v10 = vmul.f32 %v4361_v5, %v3197_v51 }
 0x345   : > { %v3168_v43 = vadd.f32 %v3163_v23, %v3158_v41  ;;  %v3188_v13 = vadd.f32 %v3183_v34, %v3178_v3  ;;  %v3210_v25 = vadd.f32 %v3205_v55, %v3198_v8  ;;  %v5478_v11 = vadd.f32 %v3205_v55, %v3200_v58 }
 0x346   : > { %v3169_v45 = vadd.f32 %v3167_v36, %v3159_v59  ;;  %v3189_v14 = vadd.f32 %v3187_v50, %v3179_v18  ;;  %v3211_v44 = vadd.f32 %v3209_v2, %v3199_v9  ;;  %v5480_v48 = vadd.f32 %v3209_v2, %v3201_v10 }
 0x347   : > { %v3214_v26 = vsel %vm359_vm0, %v3168_v43, %v3188_v13  ;;  %4364 = vst [vmem:[%s5041_s24 + $0x30] sm:$0x1] %v5478_v11  ;;  %v3223_v31 = vsel %vm1330_vm11, %v5478_v11, 0.0 }
 0x348   : > { %v5488_v15 = vsel %vm1323_vm10, %v3214_v26, %v3210_v25  ;;  %v3215_v17 = vsel %vm359_vm0, %v3169_v45, %v3189_v14  ;;  %4365 = vst [vmem:[%s5041_s24 + $0x38] sm:$0x1] %v5480_v48  ;;  %v3224_v32 = vsel %vm1330_vm11, %v5480_v48, 0.0 }
 0x349   : > { %4362 = vst [vmem:[%s5041_s24 + $0x20] sm:$0xff] %v5488_v15  ;;  %v5498_v37 = vsel %vm1323_vm10, %v3215_v17, %v3211_v44  ;;  %v4574_v19 = vpack.i.bf16 %v3223_v31, %v5488_v15  ;;  %v4457_v22 = vpack.c.bf16 %v5478_v11, %v5488_v15 }
 0x34a   : > { %4363 = vst [vmem:[%s5041_s24 + $0x28] sm:$0xff] %v5498_v37  ;;  %v4609_v42 = vpack.i.bf16 %v3224_v32, %v5498_v37  ;;  %v4454_v47 = vpack.c.bf16 %v5480_v48, %v5498_v37 }
 0x34b   : > { %4575 = vrot.lane.b32.xlu0 %v4574_v19, %s4700_s13 }
 0x34c   : > { %4610 = vrot.lane.b32.xlu1 %v4609_v42, %s4700_s13 }
 0x34f   : > { %4580 = vrot.lane.b32.xlu0 %v4574_v19, %s4699_s12 }
 0x350   : > { %4615 = vrot.lane.b32.xlu1 %v4609_v42, %s4699_s12 }
 0x353   : > { %4585 = vrot.lane.b32.xlu0 %v4574_v19, %s4701_s14 }
 0x354   : > { %4620 = vrot.lane.b32.xlu1 %v4609_v42, %s4701_s14 }
 0x357   : > { %4590 = vrot.lane.b32.xlu0 %v4574_v19, %s4702_s15 }
 0x358   : > { %4625 = vrot.lane.b32.xlu1 %v4609_v42, %s4702_s15 }
 0x35b   : > { %4595 = vrot.lane.b32.xlu0 %v4574_v19, %s4703_s16 }
 0x35c   : > { %4630 = vrot.lane.b32.xlu1 %v4609_v42, %s4703_s16 }
 0x35f   : > { %4600 = vrot.lane.b32.xlu0 %v4574_v19, %s4704_s17 }
 0x360   : > { %4635 = vrot.lane.b32.xlu1 %v4609_v42, %s4704_s17 }
 0x363   : > { %4605 = vrot.lane.b32.xlu0 %v4574_v19, %s4705_s18 }
 0x364   : > { %4640 = vrot.lane.b32.xlu1 %v4609_v42, %s4705_s18 }
 0x367   : > { %4645 = vrot.lane.b32.xlu0 %v4574_v19, %s4706_s19 }
 0x368   : > { %4650 = vrot.lane.b32.xlu1 %v4609_v42, %s4706_s19 }
 0x3bd   : > { %v4576_v27 = vpop.permute.xlu0 %4575 }
 0x3be   : > { %v4578_v28 = vunpack.i.h.bf16 %v4576_v27  ;;  %v4577_v29 = vunpack.i.l.bf16 %v4576_v27  ;;  %v4611_v30 = vpop.permute.xlu1 %4610 }
 0x3bf   : > { %v4613_v33 = vunpack.i.h.bf16 %v4611_v30  ;;  %v4612_v35 = vunpack.i.l.bf16 %v4611_v30 }
 0x3c1   : > { %v3238_v23 = vsel %vm370_vm2, %v4613_v33, %v4578_v28  ;;  %v3237_v34 = vsel %vm370_vm2, %v4612_v35, %v4577_v29  ;;  %v4581_v55 = vpop.permute.xlu0 %4580  ;;  %v3235_v36 = vsel %vm370_vm2, %v4577_v29, %v4612_v35  ;;  %v3236_v39 = vsel %vm370_vm2, %v4578_v28, %v4613_v33 }
 0x3c2   : > { %v4440_v49 = vpack.c.bf16 %v3238_v23, %v3237_v34  ;;  %v4583_v60 = vunpack.i.h.bf16 %v4581_v55  ;;  %v4582_v61 = vunpack.i.l.bf16 %v4581_v55  ;;  %v4616_v52 = vpop.permute.xlu1 %4615  ;;  %v4438_v5 = vpack.c.bf16 %v3236_v39, %v3235_v36 }
 0x3c3   : > { %v4618_v50 = vunpack.i.h.bf16 %v4616_v52  ;;  %v4617_v56 = vunpack.i.l.bf16 %v4616_v52 }
 0x3c4   : > { %4439 = vmatprep.subr.bf16.mxu1 %v4438_v5 }
 0x3c5   : > { %v3341_v57 = vsel %vm469_vm1, %v4618_v50, %v4583_v60  ;;  %v3340_v51 = vsel %vm469_vm1, %v4617_v56, %v4582_v61  ;;  %v4586_v2 = vpop.permute.xlu0 %4585  ;;  %4441 = vmatpush1.bf16.msra.mxu1 %v4440_v49  ;;  %v3338_v41 = vsel %vm469_vm1, %v4582_v61, %v4617_v56  ;;  %v3339_v3 = vsel %vm469_vm1, %v4583_v60, %v4618_v50 }
 0x3c6   : > { %v4444_v8 = vpack.c.bf16 %v3341_v57, %v3340_v51  ;;  %v4588_v58 = vunpack.i.h.bf16 %v4586_v2  ;;  %v4587_v59 = vunpack.i.l.bf16 %v4586_v2  ;;  %v4621_v18 = vpop.permute.xlu1 %4620  ;;  %v4442_v9 = vpack.c.bf16 %v3339_v3, %v3338_v41 }
 0x3c7   : > { %v4623_v10 = vunpack.i.h.bf16 %v4621_v18  ;;  %v4622_v43 = vunpack.i.l.bf16 %v4621_v18 }
 0x3c8   : > { %4443 = vmatprep.subr.bf16.mxu0 %v4442_v9  ;;  %4366 = vmatmul.mubr.msk.f32.vlgmr.msra.gmra.mrb[26].mxu1 %vm1348_vm12, %v5140_v21 }
 0x3c9   : > { %v3444_v13 = vsel %vm569_vm4, %v4623_v10, %v4588_v58  ;;  %v3443_v25 = vsel %vm569_vm4, %v4622_v43, %v4587_v59  ;;  %v4591_v45 = vpop.permute.xlu0 %4590  ;;  %4445 = vmatpush1.bf16.msra.mxu0 %v4444_v8  ;;  %v3441_v14 = vsel %vm569_vm4, %v4587_v59, %v4622_v43  ;;  %v3442_v44 = vsel %vm569_vm4, %v4588_v58, %v4623_v10 }
 0x3ca   : > { %v4448_v26 = vpack.c.bf16 %v3444_v13, %v3443_v25  ;;  %v4593_v31 = vunpack.i.h.bf16 %v4591_v45  ;;  %v4592_v17 = vunpack.i.l.bf16 %v4591_v45  ;;  %v4626_v32 = vpop.permute.xlu1 %4625  ;;  %v4446_v19 = vpack.c.bf16 %v3442_v44, %v3441_v14  ;;  %3513 = vmatprep.mubr.f32.mxu1 %v4698_v1 }
 0x3cb   : > { %v4628_v21 = vunpack.i.h.bf16 %v4626_v32  ;;  %v4627_v42 = vunpack.i.l.bf16 %v4626_v32 }
 0x3cc   : > { %4447 = vmatprep.subr.bf16.mxu1 %v4446_v19  ;;  %4368 = vmatmul.mubr.msk.f32.vlgmr.msra.gmra.mrb[28].mxu0 %vm1348_vm12, %v5155_v62 }
 0x3cd   : > { %v3547_v27 = vsel %vm669_vm5, %v4628_v21, %v4593_v31  ;;  %v3546_v28 = vsel %vm669_vm5, %v4627_v42, %v4592_v17  ;;  %v4596_v29 = vpop.permute.xlu0 %4595  ;;  %4449 = vmatpush1.bf16.msra.mxu1 %v4448_v26  ;;  %v3544_v30 = vsel %vm669_vm5, %v4592_v17, %v4627_v42  ;;  %v3545_v33 = vsel %vm669_vm5, %v4593_v31, %v4628_v21 }
 0x3ce   : > { %v4452_v35 = vpack.c.bf16 %v3547_v27, %v3546_v28  ;;  %v4598_v23 = vunpack.i.h.bf16 %v4596_v29  ;;  %v4597_v34 = vunpack.i.l.bf16 %v4596_v29  ;;  %v4631_v55 = vpop.permute.xlu1 %4630  ;;  %4456 = vmatprep.subr.msk.bf16.mxu1 %vm5159_vm14, %v4454_v47  ;;  %v4450_v62 = vpack.c.bf16 %v3545_v33, %v3544_v30  ;;  %3616 = vmatprep.mubr.f32.mxu0 %v4698_v1 }
 0x3cf   : > { %v4633_v36 = vunpack.i.h.bf16 %v4631_v55  ;;  %v4632_v39 = vunpack.i.l.bf16 %v4631_v55 }
 0x3d0   : > { %4451 = vmatprep.subr.bf16.mxu0 %v4450_v62  ;;  %4371 = vmatmul.mubr.msk.f32.vlgmr.msra.gmra.mrb[28].mxu1 %vm1348_vm12, %v5176_v12 }
 0x3d1   : > { %v3725_v49 = vsel %vm847_vm6, %v4598_v23, %v4633_v36  ;;  %v3724_v60 = vsel %vm847_vm6, %v4597_v34, %v4632_v39  ;;  %v4601_v61 = vpop.permute.xlu0 %4600  ;;  %4453 = vmatpush1.bf16.msra.mxu0 %v4452_v35  ;;  %4459 = vmatpush1.bf16.msk.msra.mxu1 %vm5159_vm14, %v4457_v22  ;;  %v3726_v48 = vsel %vm847_vm6, %v4632_v39, %v4597_v34  ;;  %v4372_v35 = vld [vmem:[%s5678_s6 + $0x2] ss:$8 sm:$0x3] }
 0x3d2   : > { %v4462_v37 = vpack.c.bf16 %v3725_v49, %v3724_v60  ;;  %v4603_v47 = vunpack.i.h.bf16 %v4601_v61  ;;  %v4602_v12 = vunpack.i.l.bf16 %v4601_v61  ;;  %v4636_v52 = vpop.permute.xlu1 %4635  ;;  %v3727_v5 = vsel %vm847_vm6, %v4633_v36, %v4598_v23  ;;  %3707 = vmatprep.mubr.f32.mxu1 %v4698_v1  ;;  %v4375_v61 = vld [vmem:[%s5678_s6 + $0x3] ss:$8 sm:$0x3] }
 0x3d3   : > { %v4638_v50 = vunpack.i.h.bf16 %v4636_v52  ;;  %v4637_v56 = vunpack.i.l.bf16 %v4636_v52  ;;  %v4460_v57 = vpack.c.bf16 %v3727_v5, %v3726_v48  ;;  %v3525_v39 = vrot.slane %v4372_v35, %v4946_v53 }
 0x3d4   : > { %4374 = vmatmul.mubr.msk.f32.vlgmr.msra.gmra.mrb[30].mxu0 %vm1348_vm12, %v5200_v38  ;;  %4379 = vmatmul.mubr.msk.f32.vlgmr.msra.gmra.mrb[30].mxu1 %vm1348_vm12, %v5205_v46  ;;  %v3529_v60 = vrot.slane %v4372_v35, %v4949_v54  ;;  %v3632_v5 = vrot.slane %v4375_v61, %v4949_v54 }
 0x3d5   : > { %v3828_v4 = vsel %vm947_vm7, %v4603_v47, %v4638_v50  ;;  %v3827_v11 = vsel %vm947_vm7, %v4602_v12, %v4637_v56  ;;  %4461 = vmatprep.subr.bf16.mxu0 %v4460_v57  ;;  %v4606_v15 = vpop.permute.xlu0 %4605  ;;  %v3829_v22 = vsel %vm947_vm7, %v4637_v56, %v4602_v12  ;;  %v3830_v51 = vsel %vm947_vm7, %v4638_v50, %v4603_v47 }
 0x3d6   : > { %v4466_v2 = vpack.c.bf16 %v3828_v4, %v3827_v11  ;;  %v4608_v41 = vunpack.i.h.bf16 %v4606_v15  ;;  %v4607_v38 = vunpack.i.l.bf16 %v4606_v15  ;;  %4463 = vmatpush1.bf16.msra.mxu0 %v4462_v37  ;;  %v4641_v3 = vpop.permute.xlu1 %4640  ;;  %v4464_v46 = vpack.c.bf16 %v3830_v51, %v3829_v22  ;;  %3796 = vmatprep.mubr.f32.mxu0 %v4698_v1  ;;  %v4382_v11 = vld [vmem:[%s5678_s6 + $0x5] ss:$8 sm:$0x3] }
 0x3d7   : > { %v4643_v8 = vunpack.i.h.bf16 %v4641_v3  ;;  %v4642_v58 = vunpack.i.l.bf16 %v4641_v3  ;;  %3899 = vmatprep.mubr.f32.mxu1 %v4698_v1  ;;  %v3808_v3 = vrot.slane %v4382_v11, %v4946_v53 }
 0x3d8   : > { %4465 = vmatprep.subr.bf16.mxu1 %v4464_v46 }
 0x3d9   : > { %v3931_v59 = vsel %vm1047_vm8, %v4608_v41, %v4643_v8  ;;  %v3930_v18 = vsel %vm1047_vm8, %v4607_v38, %v4642_v58  ;;  %v4646_v9 = vpop.permute.xlu0 %4645  ;;  %4467 = vmatpush1.bf16.msra.mxu1 %v4466_v2  ;;  %v3932_v10 = vsel %vm1047_vm8, %v4642_v58, %v4607_v38  ;;  %v3933_v43 = vsel %vm1047_vm8, %v4643_v8, %v4608_v41  ;;  %v4385_v41 = vld [vmem:[%s5678_s6 + $0x6] ss:$8 sm:$0x3] }
 0x3da   : > { %v4470_v13 = vpack.c.bf16 %v3931_v59, %v3930_v18  ;;  %v4648_v25 = vunpack.i.h.bf16 %v4646_v9  ;;  %v4647_v45 = vunpack.i.l.bf16 %v4646_v9  ;;  %v4651_v14 = vpop.permute.xlu1 %4650  ;;  %v4468_v44 = vpack.c.bf16 %v3933_v43, %v3932_v10  ;;  %4381 = vmatmul.mubr.msk.f32.vlgmr.msra.gmra.mrb[32].mxu0 %vm1348_vm12, %v5226_v7  ;;  %v4388_v43 = vld [vmem:[%s5678_s6 + $0x7] ss:$8 sm:$0x3] }
 0x3db   : > { %v4653_v26 = vunpack.i.h.bf16 %v4651_v14  ;;  %v4652_v31 = vunpack.i.l.bf16 %v4651_v14  ;;  %4002 = vmatprep.mubr.f32.mxu0 %v4698_v1  ;;  %v3812_v8 = vrot.slane %v4382_v11, %v4949_v54  ;;  %v3911_v59 = vrot.slane %v4385_v41, %v4946_v53 }
 0x3dc   : > { %4469 = vmatprep.subr.bf16.mxu0 %v4468_v44  ;;  %4384 = vmatmul.mubr.msk.f32.vlgmr.msra.gmra.mrb[32].mxu1 %vm1348_vm12, %v5240_v16  ;;  %v3314_v16 = vld [vmem:[%s5678_s6] ss:$8 sm:$0x3]  ;;  %v3915_v10 = vrot.slane %v4385_v41, %v4949_v54 }
 0x3dd   : > { %v4034_v17 = vsel %vm1147_vm9, %v4648_v25, %v4653_v26  ;;  %v4033_v32 = vsel %vm1147_vm9, %v4647_v45, %v4652_v31  ;;  %4471 = vmatpush1.bf16.msra.mxu0 %v4470_v13  ;;  %v4035_v19 = vsel %vm1147_vm9, %v4652_v31, %v4647_v45  ;;  %v4036_v7 = vsel %vm1147_vm9, %v4653_v26, %v4648_v25 }
 0x3de   : > { %v4474_v21 = vpack.c.bf16 %v4034_v17, %v4033_v32  ;;  %v4472_v42 = vpack.c.bf16 %v4036_v7, %v4035_v19  ;;  %4105 = vmatprep.mubr.f32.mxu1 %v4698_v1  ;;  %v3319_v27 = vrot.slane %v3314_v16, %v4946_v53  ;;  %v3323_v6 = vrot.slane %v3314_v16, %v4949_v54  ;;  %v4369_v1 = vld [vmem:[%s5678_s6 + $0x1] ss:$8 sm:$0x3] }
 0x3df   : > { %v4014_v17 = vrot.slane %v4388_v43, %v4946_v53  ;;  %v4018_v7 = vrot.slane %v4388_v43, %v4949_v54 }
 0x3e0   : > { %4473 = vmatprep.subr.bf16.mxu1 %v4472_v42  ;;  %4387 = vmatmul.mubr.msk.f32.vlgmr.msra.gmra.mrb[34].mxu0 %vm1348_vm12, %v5262_v40  ;;  %v3422_v40 = vrot.slane %v4369_v1, %v4946_v53 }
 0x3e1   : > { %4475 = vmatpush1.bf16.msra.mxu1 %v4474_v21  ;;  %v4391_v21 = vld [vmem:[%s5678_s6 + $0x10] ss:$8 sm:$0x3] }
 0x3e4   : > { %4390 = vmatmul.mubr.msk.f32.vlgmr.msra.gmra.mrb[34].mxu1 %vm1348_vm12, %v5278_v0  ;;  %v3426_v0 = vrot.slane %v4369_v1, %v4949_v54 }
 0x49b   : > { %v3309_v28 = vpop.f32.mrb[26].mxu1 }
 0x49c   : > { %v3326_v29 = vmul.f32 %v3319_v27, %v3309_v28  ;;  %v3311_v30 = vpop.f32.mrb[27].mxu1  ;;  %v4117_v28 = vrot.slane %v4391_v21, %v4946_v53 }
 0x49d   : > { %v3327_v33 = vmul.f32 %v3323_v6, %v3311_v30  ;;  %v4121_v30 = vrot.slane %v4391_v21, %v4949_v54 }
 0x49e   : > { %v3328_v23 = vadd.f32 %v3326_v29, %v5354_v20  ;;  %v3628_v20 = vrot.slane %v4375_v61, %v4946_v53 }
 0x49f   : > { %v3329_v34 = vadd.f32 %v3327_v33, %v5359_v24  ;;  %v3412_v55 = vpop.f32.mrb[28].mxu0 }
 0x4a0   : > { %v3429_v62 = vmul.f32 %v3422_v40, %v3412_v55  ;;  %v3414_v36 = vpop.f32.mrb[29].mxu0 }
 0x4a1   : > { %v3430_v49 = vmul.f32 %v3426_v0, %v3414_v36 }
 0x4a2   : > { %v3431_v48 = vadd.f32 %v3429_v62, %v3328_v23 }
 0x4a3   : > { %v3432_v37 = vadd.f32 %v3430_v49, %v3329_v34  ;;  %v3515_v47 = vpop.f32.mrb[28].mxu1 }
 0x4a4   : > { %v3532_v12 = vmul.f32 %v3525_v39, %v3515_v47  ;;  %v3517_v52 = vpop.f32.mrb[29].mxu1 }
 0x4a5   : > { %v3533_v24 = vmul.f32 %v3529_v60, %v3517_v52 }
 0x4a6   : > { %v3534_v50 = vadd.f32 %v3532_v12, %v3431_v48 }
 0x4a7   : > { %v3535_v56 = vadd.f32 %v3533_v24, %v3432_v37  ;;  %v3618_v57 = vpop.f32.mrb[30].mxu0  ;;  %v3709_v4 = vpop.f32.mrb[30].mxu1 }
 0x4a8   : > { %v3635_v15 = vmul.f32 %v3628_v20, %v3618_v57  ;;  %v3620_v22 = vpop.f32.mrb[31].mxu0  ;;  %v3711_v51 = vpop.f32.mrb[31].mxu1 }
 0x4a9   : > { %v3636_v2 = vmul.f32 %v3632_v5, %v3620_v22 }
 0x4aa   : > { %v3637_v38 = vadd.f32 %v3635_v15, %v3534_v50 }
 0x4ab   : > { %v3638_v46 = vadd.f32 %v3636_v2, %v3535_v56  ;;  %v4689_v56 = vld [vmem:[%s4769_s11 + $0x8] sm:$0x77] }
 0x4ac   : > { %v3714_v58 = vadd.f32 %v3709_v4, %v3637_v38 }
 0x4ad   : > { %v3798_v18 = vpop.f32.mrb[32].mxu0  ;;  %v3715_v9 = vadd.f32 %v3711_v51, %v3638_v46 }
 0x4ae   : > { %v3815_v13 = vmul.f32 %v3808_v3, %v3798_v18  ;;  %v3800_v25 = vpop.f32.mrb[33].mxu0 }
 0x4af   : > { %v3816_v45 = vmul.f32 %v3812_v8, %v3800_v25  ;;  %v3901_v14 = vpop.f32.mrb[32].mxu1 }
 0x4b0   : > { %v3817_v44 = vadd.f32 %v3815_v13, %v3714_v58  ;;  %v3918_v26 = vmul.f32 %v3911_v59, %v3901_v14  ;;  %v3903_v31 = vpop.f32.mrb[33].mxu1 }
 0x4b1   : > { %v3818_v32 = vadd.f32 %v3816_v45, %v3715_v9  ;;  %v3919_v19 = vmul.f32 %v3915_v10, %v3903_v31 }
 0x4b2   : > { %v3920_v42 = vadd.f32 %v3918_v26, %v3817_v44 }
 0x4b3   : > { %v3921_v16 = vadd.f32 %v3919_v19, %v3818_v32  ;;  %v4004_v27 = vpop.f32.mrb[34].mxu0 }
 0x4b4   : > { %v4021_v6 = vmul.f32 %v4014_v17, %v4004_v27  ;;  %v4006_v1 = vpop.f32.mrb[35].mxu0 }
 0x4b5   : > { %v4022_v29 = vmul.f32 %v4018_v7, %v4006_v1 }
 0x4b6   : > { %v4023_v40 = vadd.f32 %v4021_v6, %v3920_v42 }
 0x4b7   : > { %v4024_v33 = vadd.f32 %v4022_v29, %v3921_v16  ;;  %v4107_v0 = vpop.f32.mrb[34].mxu1 }
 0x4b8   : > { %v4124_v35 = vmul.f32 %v4117_v28, %v4107_v0  ;;  %v4109_v23 = vpop.f32.mrb[35].mxu1 }
 0x4b9   : > { %v4125_v34 = vmul.f32 %v4121_v30, %v4109_v23 }
 0x4ba   : > { %v4126_v55 = vadd.f32 %v4124_v35, %v4023_v40 }
 0x4bb   : > { %v4127_v62 = vadd.f32 %v4125_v34, %v4024_v33 }
 0x4bc   : > { %v4128_v36 = vmul.f32 0.5, %v4126_v55 }
 0x4bd   : > { %v4129_v39 = vmul.f32 0.5, %v4127_v62  ;;  %v4145_v49 = vcombine.low %v4126_v55, %v4127_v62  ;;  %v4146_v60 = vcombine.high %v4126_v55, %v4127_v62 }
 0x4be   : > { %4680 = vtanh.f32 %v4128_v36 }
 0x4bf   : > { %4682 = vtanh.f32 %v4129_v39  ;;  %v4392_v61 = vrot.slane %v4145_v49, 11  ;;  %v4149_v53 = vrot.slane %v4146_v60, 7 }
 0x4c1   : > { %v4150_v54 = vsel %vm5424_vm3, %v4392_v61, %v4149_v53 }
 0x4c8   : > { %v4681_v48 = vpop.eup %4680 }
 0x4c9   : > { %v4683_v37 = vpop.eup %4682  ;;  %v4132_v47 = vmul.f32 0.8, %v4681_v48 }
 0x4ca   : > { %v4133_v12 = vmul.f32 0.8, %v4683_v37 }
 0x4cb   : > { %v4134_v52 = vmul.f32 1.442695, %v4132_v47 }
 0x4cc   : > { %v4136_v20 = vmul.f32 1.442695, %v4133_v12 }
 0x4cd   : > { %4684 = vpow2.f32 %v4134_v52 }
 0x4ce   : > { %4686 = vpow2.f32 %v4136_v20 }
 0x4d7   : > { %v4685_v24 = vpop.eup %4684 }
 0x4d8   : > { %v4687_v5 = vpop.eup %4686 }
 0x4d9   : > { %v4140_v50 = vcombine.low %v4685_v24, %v4687_v5 }
 0x4db   : > { %v4142_v57 = vmul.f32 %v4689_v56, %v4140_v50 }
 0x4dd   : > { %v4152_v4 = vadd.f32 %v4150_v54, %v4142_v57 }
 0x4df   : > { %4393 = vst [vmem:[%s5459_s28 + $0x8] sm:$0x77] %v4152_v4 }
 0x4e0 PF: > { %s19_s27 = sadd.s32 1, %s4696_s27  }
 0x4e1   : > { %p16_p4 = scmp.ge.s32.totalorder %s19_s27, 4  }
 0x4e3   :  { %18 = sbr.rel (!%p16_p4) target bundleno = 1 (0x1), region = 120 }

</bundles_post_ra>
